<compile_context>
chip_gen: v7x
topology: tpu7x:2x2x1
jax: 0.10.0
libtpu: 0.0.40
codegen_flags: <defaults>
</compile_context>

<pallas_src>
from functools import partial

import jax
import jax.numpy as jnp
from jax import lax
from jax.experimental import pallas as pl
from jax.experimental.pallas import tpu as pltpu


def _ffn_mtl_kernel(seed_ref, x_ref, w0_ref, wt_ref, bt_ref,
                    wh1_ref, wh2_ref, wh3_ref, bh_ref, bo_ref,
                    out_ref, *, drop_p, act_dtype):
    seed_u32 = seed_ref[0].astype(jnp.uint32)
    keep_thr = min(int(round((1.0 - drop_p) * 4294967296.0)), 4294967295)

    def dropout(v, site):
        """Keep-mask dropout via a counter-based hash PRNG (no HW PRNG).

        The 1/(1-p) inverted-dropout rescale is folded into the consuming
        layer's weights at pack time, so only the 0/1 mask is applied here.
        """
        if drop_p <= 0.0:
            return v
        rows = v.shape[0]
        # Unique (global_row, lane, site, seed) counter per element.
        r = lax.broadcasted_iota(jnp.int32, v.shape, 0) + pl.program_id(0) * rows
        c = lax.broadcasted_iota(jnp.int32, v.shape, 1)
        h = r.astype(jnp.uint32) * jnp.uint32(0x9E3779B1)
        h = h + c.astype(jnp.uint32) * jnp.uint32(0x85EBCA77)
        h = h ^ jnp.uint32((site * 0x27D4EB2F + 0x165667B1) & 0xFFFFFFFF)
        h = h ^ seed_u32
        # splitmix32-style finalizer (logical shifts: h is uint32)
        h = h ^ (h >> 16)
        h = h * jnp.uint32(0x7FEB352D)
        h = h ^ (h >> 15)
        h = h * jnp.uint32(0x846CA68B)
        h = h ^ (h >> 16)
        keep = h < jnp.uint32(keep_thr)
        return jnp.where(keep, v, jnp.zeros_like(v))

    def dense(v, w, b):
        # bf16 MXU operands, f32 accumulation, f32 bias add.
        return jnp.dot(v.astype(jnp.bfloat16), w,
                       preferred_element_type=jnp.float32) + b

    bt = bt_ref[...]   # (4, F*H)   f32 : [linear, fc_1, fc_2, fc_3] biases
    bh = bh_ref[...]   # (2, F*3H)  f32 : [fc_*_1, fc_*_2] biases (acc|flu|com)

    # Shared trunk: linear, fc_1, fc_2, fc_3 — each tanh -> dropout.
    # (batch rows are folded into lanes: lanes [f*H:(f+1)*H] hold fold f)
    h = dropout(jnp.tanh(dense(x_ref[...], w0_ref[...],
                               bt[0:1, :]).astype(act_dtype)), 0)
    for i in range(3):
        h = dropout(jnp.tanh(dense(h, wt_ref[i],
                                   bt[i + 1:i + 2, :]).astype(act_dtype)), i + 1)

    # Heads fused on the lane axis (per fold: [acc H | flu H | com H]).
    h1 = dropout(jnp.tanh(dense(h, wh1_ref[...],
                                bh[0:1, :]).astype(act_dtype)), 4)     # fc_*_1
    inter = dropout(dense(h1, wh2_ref[...],
                          bh[1:2, :]).astype(act_dtype), 5)            # fc_*_2 (no tanh)
    out = dense(inter, wh3_ref[...], bo_ref[...])                      # fc_acc/flu/com
    out_ref[...] = out.astype(out_ref.dtype)                           # (tb, fold*3)


def simple_ffn_mtl(x, packed, drop_p, seed=0, *, block_rows=512,
                   act_dtype=jnp.bfloat16):
    """Returns [acc_out, flu_out, com_out], each (B, 1) float32.

    block_rows counts *folded* rows (fold batch rows per folded row), so the
    default 512 corresponds to 2048 original batch rows per grid step.
    On v5e pass act_dtype=jnp.float32 (no bf16 VPU/EUP there).
    """
    F = packed["fold"]
    B, D = x.shape
    assert D == packed["phono_dim"]

    Bf = -(-B // F)                       # folded rows needed
    tb = min(block_rows, Bf)
    tb = ((tb + 7) // 8) * 8              # sublane-aligned batch tile
    Bf_pad = ((Bf + tb - 1) // tb) * tb
    B_pad = Bf_pad * F
    if B_pad != B:
        x = jnp.pad(x, ((0, B_pad - B), (0, 0)))
    # Fold F consecutive batch rows into the lane axis and ship bf16
    # (halves the dominant x DMA stream; MXU truncates to bf16 anyway).
    xf = x.reshape(Bf_pad, F * D).astype(jnp.bfloat16)

    seed_arr = jnp.array([seed], dtype=jnp.int32)
    grid = (Bf_pad // tb,)

    def full(a):  # whole-array block, resident across the batch grid
        return pl.BlockSpec(a.shape, lambda i, s, nd=a.ndim: (0,) * nd)

    # NOTE: output is (Bf_pad, 3*F) — 12 lanes with fold=4.  Write traffic is
    # tiny (12 B per original row); a fully lane-dense transposed store is
    # only worth it for huge B.
    out = pl.pallas_call(
        partial(_ffn_mtl_kernel, drop_p=drop_p, act_dtype=act_dtype),
        out_shape=jax.ShapeDtypeStruct((Bf_pad, 3 * F), jnp.float32),
        grid_spec=pltpu.PrefetchScalarGridSpec(
            num_scalar_prefetch=1,
            grid=grid,
            in_specs=[
                pl.BlockSpec((tb, F * D), lambda i, s: (i, 0)),   # folded x
                full(packed["w0"]),
                full(packed["w_trunk"]),
                full(packed["b_trunk"]),
                full(packed["wh1"]),
                full(packed["wh2"]),
                full(packed["wh3"]),
                full(packed["bh"]),
                full(packed["bo"]),
            ],
            out_specs=pl.BlockSpec((tb, 3 * F), lambda i, s: (i, 0)),
        ),
        compiler_params=pltpu.CompilerParams(
            dimension_semantics=("parallel",)),
    )(seed_arr, xf,
      packed["w0"], packed["w_trunk"], packed["b_trunk"],
      packed["wh1"], packed["wh2"], packed["wh3"],
      packed["bh"], packed["bo"])

    out = out.reshape(B_pad, 3)[:B]       # un-fold: row r*F+f <- (r, f*3:(f+1)*3)
    return [out[:, 0:1], out[:, 1:2], out[:, 2:3]]


# ------------------------- parameter construction -------------------------

def _init_linear(key, in_dim, out_dim):
    """PyTorch nn.Linear default init; weight stored (in, out)."""
    kw, kb = jax.random.split(key)
    bound = 1.0 / (in_dim ** 0.5)
    w = jax.random.uniform(kw, (in_dim, out_dim), jnp.float32, -bound, bound)
    b = jax.random.uniform(kb, (out_dim,), jnp.float32, -bound, bound)
    return w, b


def make_raw_params(key, phono_dim, hidden):
    layers = [
        ("linear", phono_dim, hidden),
        ("fc_1", hidden, hidden), ("fc_2", hidden, hidden), ("fc_3", hidden, hidden),
        ("fc_acc_1", hidden, hidden), ("fc_acc_2", hidden, hidden), ("fc_acc", hidden, 1),
        ("fc_flu_1", hidden, hidden), ("fc_flu_2", hidden, hidden), ("fc_flu", hidden, 1),
        ("fc_com_1", hidden, hidden), ("fc_com_2", hidden, hidden), ("fc_com", hidden, 1),
    ]
    keys = jax.random.split(key, len(layers))
    return {n: _init_linear(k, i, o) for k, (n, i, o) in zip(keys, layers)}


def _block_diag_repeat(w, fold):
    """(in, out) -> (fold*in, fold*out) block-diagonal of `fold` copies."""
    if fold == 1:
        return w
    i, o = w.shape
    out = jnp.zeros((fold * i, fold * o), w.dtype)
    for f in range(fold):
        out = out.at[f * i:(f + 1) * i, f * o:(f + 1) * o].set(w)
    return out


def pack_params(raw, drop_p, fold=None):
    """Pack/fuse the 13 Linear layers into 9 kernel arrays.

    - Batch-fold: every weight becomes a block-diagonal of `fold` copies so
      `fold` batch rows ride the lane axis (lane-dense vreg work for H << 128).
    - The three heads are fused on the lane axis (block-diagonal fc_*_2 and
      fc_* weights) -> 3 matmuls for all heads.
    - The inverted-dropout scale 1/(1-p) is folded into each consuming layer.
    """
    H = raw["fc_1"][0].shape[0]
    D = raw["linear"][0].shape[0]
    if fold is None:
        fold = max(1, 128 // H)
    F = fold
    s = 1.0 / (1.0 - drop_p) if drop_p > 0.0 else 1.0
    wdt = jnp.bfloat16

    def tile_b(b):
        return jnp.tile(b, F)

    w0 = _block_diag_repeat(raw["linear"][0], F)                       # (F*D, F*H)
    w_trunk = jnp.stack([_block_diag_repeat(raw[n][0], F)
                         for n in ("fc_1", "fc_2", "fc_3")]) * s       # (3, F*H, F*H)
    b_trunk = jnp.stack([tile_b(raw[n][1])
                         for n in ("linear", "fc_1", "fc_2", "fc_3")])  # (4, F*H)

    wh1_f = jnp.concatenate([raw["fc_acc_1"][0], raw["fc_flu_1"][0],
                             raw["fc_com_1"][0]], axis=1)              # (H, 3H)
    wh1 = _block_diag_repeat(wh1_f, F) * s                             # (F*H, F*3H)

    z = jnp.zeros((H, H), jnp.float32)
    wh2_f = jnp.concatenate([                                          # (3H, 3H) block-diag
        jnp.concatenate([raw["fc_acc_2"][0], z, z], axis=1),
        jnp.concatenate([z, raw["fc_flu_2"][0], z], axis=1),
        jnp.concatenate([z, z, raw["fc_com_2"][0]], axis=1),
    ], axis=0)
    wh2 = _block_diag_repeat(wh2_f, F) * s                             # (F*3H, F*3H)

    zc = jnp.zeros((H, 1), jnp.float32)
    wh3_f = jnp.concatenate([                                          # (3H, 3)
        jnp.concatenate([raw["fc_acc"][0], zc, zc], axis=1),
        jnp.concatenate([zc, raw["fc_flu"][0], zc], axis=1),
        jnp.concatenate([zc, zc, raw["fc_com"][0]], axis=1),
    ], axis=0)
    wh3 = _block_diag_repeat(wh3_f, F) * s                             # (F*3H, F*3)

    bh = jnp.stack([
        tile_b(jnp.concatenate([raw["fc_acc_1"][1], raw["fc_flu_1"][1],
                                raw["fc_com_1"][1]])),
        tile_b(jnp.concatenate([raw["fc_acc_2"][1], raw["fc_flu_2"][1],
                                raw["fc_com_2"][1]])),
    ])                                                                 # (2, F*3H)
    bo = tile_b(jnp.concatenate([raw["fc_acc"][1], raw["fc_flu"][1],
                                 raw["fc_com"][1]])).reshape(1, F * 3)  # (1, F*3)

    return {
        "w0": w0.astype(wdt),
        "w_trunk": w_trunk.astype(wdt),
        "b_trunk": b_trunk.astype(jnp.float32),
        "wh1": wh1.astype(wdt),
        "wh2": wh2.astype(wdt),
        "wh3": wh3.astype(wdt),
        "bh": bh.astype(jnp.float32),
        "bo": bo.astype(jnp.float32),
        "fold": F,
        "phono_dim": D,
        "hidden": H,
    }


if __name__ == "__main__":
    PHONO_DIM = 32
    FC_HIDDEN_DIM = 32
    BATCH = 8
    DROPOUT = 0.3

    root = jax.random.PRNGKey(0)
    k_params, k_x = jax.random.split(root)

    raw = make_raw_params(k_params, PHONO_DIM, FC_HIDDEN_DIM)
    packed = pack_params(raw, DROPOUT)
    x = jax.random.normal(k_x, (BATCH, PHONO_DIM), dtype=jnp.float32)

    acc_out, flu_out, com_out = simple_ffn_mtl(x, packed, DROPOUT, seed=0)
    jax.block_until_ready((acc_out, flu_out, com_out))

    assert acc_out.shape == (BATCH, 1)
    assert flu_out.shape == (BATCH, 1)
    assert com_out.shape == (BATCH, 1)
    assert bool(jnp.all(jnp.isfinite(acc_out)))
    assert bool(jnp.all(jnp.isfinite(flu_out)))
    assert bool(jnp.all(jnp.isfinite(com_out)))
    print("KERNEL_OK")
</pallas_src>

<mosaic_0001>
module attributes {stable_mosaic.version = 11 : i64} {
  func.func @_ffn_mtl_kernel(%arg0: i32, %arg1: memref<1xi32, #tpu.memory_space<smem>>, %arg2: memref<8x128xbf16, #tpu.memory_space<vmem>>, %arg3: memref<128x128xbf16, #tpu.memory_space<vmem>>, %arg4: memref<3x128x128xbf16, #tpu.memory_space<vmem>>, %arg5: memref<4x128xf32, #tpu.memory_space<vmem>>, %arg6: memref<128x384xbf16, #tpu.memory_space<vmem>>, %arg7: memref<384x384xbf16, #tpu.memory_space<vmem>>, %arg8: memref<384x12xbf16, #tpu.memory_space<vmem>>, %arg9: memref<2x384xf32, #tpu.memory_space<vmem>>, %arg10: memref<1x12xf32, #tpu.memory_space<vmem>>, %arg11: memref<8x12xf32, #tpu.memory_space<vmem>>) attributes {dimension_semantics = [#tpu.dimension_semantics<parallel>], iteration_bounds = array<i64: 1>, scalar_prefetch = 1 : i64, scratch_operands = 0 : i64, tpu.core_type = #tpu.core_type<tc>, window_params = [{transform_indices = @transform_0, window_bounds = array<i64: 8, 128>}, {pipeline_mode = #tpu.pipeline_mode<synchronous>, transform_indices = @transform_1, window_bounds = array<i64: 128, 128>}, {pipeline_mode = #tpu.pipeline_mode<synchronous>, transform_indices = @transform_2, window_bounds = array<i64: 3, 128, 128>}, {pipeline_mode = #tpu.pipeline_mode<synchronous>, transform_indices = @transform_3, window_bounds = array<i64: 4, 128>}, {pipeline_mode = #tpu.pipeline_mode<synchronous>, transform_indices = @transform_4, window_bounds = array<i64: 128, 384>}, {pipeline_mode = #tpu.pipeline_mode<synchronous>, transform_indices = @transform_5, window_bounds = array<i64: 384, 384>}, {pipeline_mode = #tpu.pipeline_mode<synchronous>, transform_indices = @transform_6, window_bounds = array<i64: 384, 12>}, {pipeline_mode = #tpu.pipeline_mode<synchronous>, transform_indices = @transform_7, window_bounds = array<i64: 2, 384>}, {pipeline_mode = #tpu.pipeline_mode<synchronous>, transform_indices = @transform_8, window_bounds = array<i64: 1, 12>}, {transform_indices = @transform_9, window_bounds = array<i64: 8, 12>}]} {
    %c0 = arith.constant 0 : index
    %0 = memref.load %arg1[%c0] : memref<1xi32, #tpu.memory_space<smem>>
    %c0_0 = arith.constant 0 : index
    %c0_1 = arith.constant 0 : index
    %1 = vector.load %arg5[%c0_0, %c0_1] : memref<4x128xf32, #tpu.memory_space<vmem>>, vector<4x128xf32>
    %c0_2 = arith.constant 0 : index
    %c0_3 = arith.constant 0 : index
    %2 = vector.load %arg9[%c0_2, %c0_3] : memref<2x384xf32, #tpu.memory_space<vmem>>, vector<2x384xf32>
    %c0_4 = arith.constant 0 : index
    %c0_5 = arith.constant 0 : index
    %3 = vector.load %arg2[%c0_4, %c0_5] : memref<8x128xbf16, #tpu.memory_space<vmem>>, vector<8x128xbf16>
    %c0_6 = arith.constant 0 : index
    %c0_7 = arith.constant 0 : index
    %4 = vector.load %arg3[%c0_6, %c0_7] : memref<128x128xbf16, #tpu.memory_space<vmem>>, vector<128x128xbf16>
    %5 = vector.extract_strided_slice %1 {offsets = [0, 0], sizes = [1, 128], strides = [1, 1]} : vector<4x128xf32> to vector<1x128xf32>
    %cst = arith.constant dense<0.000000e+00> : vector<8x128xf32>
    %6 = tpu.matmul %3, %4, %cst {dimension_numbers = #tpu.dot_dimension_numbers<[1], [0], [0], [1], [0, 0, 1, 1], [], []>} : vector<8x128xbf16>, vector<128x128xbf16>, vector<8x128xf32> -> vector<8x128xf32>
    %7 = vector.broadcast %5 : vector<1x128xf32> to vector<8x128xf32>
    %8 = arith.addf %6, %7 : vector<8x128xf32>
    %9 = arith.truncf %8 : vector<8x128xf32> to vector<8x128xbf16>
    %10 = math.tanh %9 : vector<8x128xbf16>
    %11 = tpu.iota {dimensions = array<i32: 0>} : vector<8x128xi32>
    %c8_i32 = arith.constant 8 : i32
    %12 = arith.muli %arg0, %c8_i32 : i32
    %13 = vector.broadcast %12 : i32 to vector<8x128xi32>
    %14 = arith.addi %11, %13 : vector<8x128xi32>
    %15 = tpu.iota {dimensions = array<i32: 1>} : vector<8x128xi32>
    %c-1640531535_i32 = arith.constant -1640531535 : i32
    %16 = vector.broadcast %c-1640531535_i32 : i32 to vector<8x128xi32>
    %17 = arith.muli %14, %16 : vector<8x128xi32>
    %c-2048144777_i32 = arith.constant -2048144777 : i32
    %18 = vector.broadcast %c-2048144777_i32 : i32 to vector<8x128xi32>
    %19 = arith.muli %15, %18 : vector<8x128xi32>
    %20 = arith.addi %17, %19 : vector<8x128xi32>
    %c374761393_i32 = arith.constant 374761393 : i32
    %21 = vector.broadcast %c374761393_i32 : i32 to vector<8x128xi32>
    %22 = arith.xori %20, %21 : vector<8x128xi32>
    %23 = vector.broadcast %0 : i32 to vector<8x128xi32>
    %24 = arith.xori %22, %23 : vector<8x128xi32>
    %c16_i32 = arith.constant 16 : i32
    %25 = vector.broadcast %c16_i32 : i32 to vector<8x128xi32>
    %26 = arith.shrui %24, %25 : vector<8x128xi32>
    %27 = arith.xori %24, %26 : vector<8x128xi32>
    %c2146121005_i32 = arith.constant 2146121005 : i32
    %28 = vector.broadcast %c2146121005_i32 : i32 to vector<8x128xi32>
    %29 = arith.muli %27, %28 : vector<8x128xi32>
    %c15_i32 = arith.constant 15 : i32
    %30 = vector.broadcast %c15_i32 : i32 to vector<8x128xi32>
    %31 = arith.shrui %29, %30 : vector<8x128xi32>
    %32 = arith.xori %29, %31 : vector<8x128xi32>
    %c-2073254261_i32 = arith.constant -2073254261 : i32
    %33 = vector.broadcast %c-2073254261_i32 : i32 to vector<8x128xi32>
    %34 = arith.muli %32, %33 : vector<8x128xi32>
    %c16_i32_8 = arith.constant 16 : i32
    %35 = vector.broadcast %c16_i32_8 : i32 to vector<8x128xi32>
    %36 = arith.shrui %34, %35 : vector<8x128xi32>
    %37 = arith.xori %34, %36 : vector<8x128xi32>
    %c-1288490189_i32 = arith.constant -1288490189 : i32
    %38 = vector.broadcast %c-1288490189_i32 : i32 to vector<8x128xi32>
    %39 = arith.cmpi ult, %37, %38 : vector<8x128xi32>
    %cst_9 = arith.constant 0.000000e+00 : bf16
    %40 = vector.broadcast %cst_9 : bf16 to vector<8x128xbf16>
    %41 = arith.select %39, %10, %40 : vector<8x128xi1>, vector<8x128xbf16>
    %c0_10 = arith.constant 0 : index
    %c0_11 = arith.constant 0 : index
    %c0_12 = arith.constant 0 : index
    %42 = vector.load %arg4[%c0_10, %c0_11, %c0_12] : memref<3x128x128xbf16, #tpu.memory_space<vmem>>, vector<1x128x128xbf16>
    %43 = vector.shape_cast %42 : vector<1x128x128xbf16> to vector<128x128xbf16>
    %44 = vector.extract_strided_slice %1 {offsets = [1, 0], sizes = [1, 128], strides = [1, 1]} : vector<4x128xf32> to vector<1x128xf32>
    %cst_13 = arith.constant dense<0.000000e+00> : vector<8x128xf32>
    %45 = tpu.matmul %41, %43, %cst_13 {dimension_numbers = #tpu.dot_dimension_numbers<[1], [0], [0], [1], [0, 0, 1, 1], [], []>} : vector<8x128xbf16>, vector<128x128xbf16>, vector<8x128xf32> -> vector<8x128xf32>
    %46 = vector.broadcast %44 : vector<1x128xf32> to vector<8x128xf32>
    %47 = arith.addf %45, %46 : vector<8x128xf32>
    %48 = arith.truncf %47 : vector<8x128xf32> to vector<8x128xbf16>
    %49 = math.tanh %48 : vector<8x128xbf16>
    %50 = tpu.iota {dimensions = array<i32: 0>} : vector<8x128xi32>
    %c8_i32_14 = arith.constant 8 : i32
    %51 = arith.muli %arg0, %c8_i32_14 : i32
    %52 = vector.broadcast %51 : i32 to vector<8x128xi32>
    %53 = arith.addi %50, %52 : vector<8x128xi32>
    %54 = tpu.iota {dimensions = array<i32: 1>} : vector<8x128xi32>
    %c-1640531535_i32_15 = arith.constant -1640531535 : i32
    %55 = vector.broadcast %c-1640531535_i32_15 : i32 to vector<8x128xi32>
    %56 = arith.muli %53, %55 : vector<8x128xi32>
    %c-2048144777_i32_16 = arith.constant -2048144777 : i32
    %57 = vector.broadcast %c-2048144777_i32_16 : i32 to vector<8x128xi32>
    %58 = arith.muli %54, %57 : vector<8x128xi32>
    %59 = arith.addi %56, %58 : vector<8x128xi32>
    %c1043026656_i32 = arith.constant 1043026656 : i32
    %60 = vector.broadcast %c1043026656_i32 : i32 to vector<8x128xi32>
    %61 = arith.xori %59, %60 : vector<8x128xi32>
    %62 = vector.broadcast %0 : i32 to vector<8x128xi32>
    %63 = arith.xori %61, %62 : vector<8x128xi32>
    %c16_i32_17 = arith.constant 16 : i32
    %64 = vector.broadcast %c16_i32_17 : i32 to vector<8x128xi32>
    %65 = arith.shrui %63, %64 : vector<8x128xi32>
    %66 = arith.xori %63, %65 : vector<8x128xi32>
    %c2146121005_i32_18 = arith.constant 2146121005 : i32
    %67 = vector.broadcast %c2146121005_i32_18 : i32 to vector<8x128xi32>
    %68 = arith.muli %66, %67 : vector<8x128xi32>
    %c15_i32_19 = arith.constant 15 : i32
    %69 = vector.broadcast %c15_i32_19 : i32 to vector<8x128xi32>
    %70 = arith.shrui %68, %69 : vector<8x128xi32>
    %71 = arith.xori %68, %70 : vector<8x128xi32>
    %c-2073254261_i32_20 = arith.constant -2073254261 : i32
    %72 = vector.broadcast %c-2073254261_i32_20 : i32 to vector<8x128xi32>
    %73 = arith.muli %71, %72 : vector<8x128xi32>
    %c16_i32_21 = arith.constant 16 : i32
    %74 = vector.broadcast %c16_i32_21 : i32 to vector<8x128xi32>
    %75 = arith.shrui %73, %74 : vector<8x128xi32>
    %76 = arith.xori %73, %75 : vector<8x128xi32>
    %c-1288490189_i32_22 = arith.constant -1288490189 : i32
    %77 = vector.broadcast %c-1288490189_i32_22 : i32 to vector<8x128xi32>
    %78 = arith.cmpi ult, %76, %77 : vector<8x128xi32>
    %cst_23 = arith.constant 0.000000e+00 : bf16
    %79 = vector.broadcast %cst_23 : bf16 to vector<8x128xbf16>
    %80 = arith.select %78, %49, %79 : vector<8x128xi1>, vector<8x128xbf16>
    %c1 = arith.constant 1 : index
    %c0_24 = arith.constant 0 : index
    %c0_25 = arith.constant 0 : index
    %81 = vector.load %arg4[%c1, %c0_24, %c0_25] : memref<3x128x128xbf16, #tpu.memory_space<vmem>>, vector<1x128x128xbf16>
    %82 = vector.shape_cast %81 : vector<1x128x128xbf16> to vector<128x128xbf16>
    %83 = vector.extract_strided_slice %1 {offsets = [2, 0], sizes = [1, 128], strides = [1, 1]} : vector<4x128xf32> to vector<1x128xf32>
    %cst_26 = arith.constant dense<0.000000e+00> : vector<8x128xf32>
    %84 = tpu.matmul %80, %82, %cst_26 {dimension_numbers = #tpu.dot_dimension_numbers<[1], [0], [0], [1], [0, 0, 1, 1], [], []>} : vector<8x128xbf16>, vector<128x128xbf16>, vector<8x128xf32> -> vector<8x128xf32>
    %85 = vector.broadcast %83 : vector<1x128xf32> to vector<8x128xf32>
    %86 = arith.addf %84, %85 : vector<8x128xf32>
    %87 = arith.truncf %86 : vector<8x128xf32> to vector<8x128xbf16>
    %88 = math.tanh %87 : vector<8x128xbf16>
    %89 = tpu.iota {dimensions = array<i32: 0>} : vector<8x128xi32>
    %c8_i32_27 = arith.constant 8 : i32
    %90 = arith.muli %arg0, %c8_i32_27 : i32
    %91 = vector.broadcast %90 : i32 to vector<8x128xi32>
    %92 = arith.addi %89, %91 : vector<8x128xi32>
    %93 = tpu.iota {dimensions = array<i32: 1>} : vector<8x128xi32>
    %c-1640531535_i32_28 = arith.constant -1640531535 : i32
    %94 = vector.broadcast %c-1640531535_i32_28 : i32 to vector<8x128xi32>
    %95 = arith.muli %92, %94 : vector<8x128xi32>
    %c-2048144777_i32_29 = arith.constant -2048144777 : i32
    %96 = vector.broadcast %c-2048144777_i32_29 : i32 to vector<8x128xi32>
    %97 = arith.muli %93, %96 : vector<8x128xi32>
    %98 = arith.addi %95, %97 : vector<8x128xi32>
    %c1711291919_i32 = arith.constant 1711291919 : i32
    %99 = vector.broadcast %c1711291919_i32 : i32 to vector<8x128xi32>
    %100 = arith.xori %98, %99 : vector<8x128xi32>
    %101 = vector.broadcast %0 : i32 to vector<8x128xi32>
    %102 = arith.xori %100, %101 : vector<8x128xi32>
    %c16_i32_30 = arith.constant 16 : i32
    %103 = vector.broadcast %c16_i32_30 : i32 to vector<8x128xi32>
    %104 = arith.shrui %102, %103 : vector<8x128xi32>
    %105 = arith.xori %102, %104 : vector<8x128xi32>
    %c2146121005_i32_31 = arith.constant 2146121005 : i32
    %106 = vector.broadcast %c2146121005_i32_31 : i32 to vector<8x128xi32>
    %107 = arith.muli %105, %106 : vector<8x128xi32>
    %c15_i32_32 = arith.constant 15 : i32
    %108 = vector.broadcast %c15_i32_32 : i32 to vector<8x128xi32>
    %109 = arith.shrui %107, %108 : vector<8x128xi32>
    %110 = arith.xori %107, %109 : vector<8x128xi32>
    %c-2073254261_i32_33 = arith.constant -2073254261 : i32
    %111 = vector.broadcast %c-2073254261_i32_33 : i32 to vector<8x128xi32>
    %112 = arith.muli %110, %111 : vector<8x128xi32>
    %c16_i32_34 = arith.constant 16 : i32
    %113 = vector.broadcast %c16_i32_34 : i32 to vector<8x128xi32>
    %114 = arith.shrui %112, %113 : vector<8x128xi32>
    %115 = arith.xori %112, %114 : vector<8x128xi32>
    %c-1288490189_i32_35 = arith.constant -1288490189 : i32
    %116 = vector.broadcast %c-1288490189_i32_35 : i32 to vector<8x128xi32>
    %117 = arith.cmpi ult, %115, %116 : vector<8x128xi32>
    %cst_36 = arith.constant 0.000000e+00 : bf16
    %118 = vector.broadcast %cst_36 : bf16 to vector<8x128xbf16>
    %119 = arith.select %117, %88, %118 : vector<8x128xi1>, vector<8x128xbf16>
    %c2 = arith.constant 2 : index
    %c0_37 = arith.constant 0 : index
    %c0_38 = arith.constant 0 : index
    %120 = vector.load %arg4[%c2, %c0_37, %c0_38] : memref<3x128x128xbf16, #tpu.memory_space<vmem>>, vector<1x128x128xbf16>
    %121 = vector.shape_cast %120 : vector<1x128x128xbf16> to vector<128x128xbf16>
    %122 = vector.extract_strided_slice %1 {offsets = [3, 0], sizes = [1, 128], strides = [1, 1]} : vector<4x128xf32> to vector<1x128xf32>
    %cst_39 = arith.constant dense<0.000000e+00> : vector<8x128xf32>
    %123 = tpu.matmul %119, %121, %cst_39 {dimension_numbers = #tpu.dot_dimension_numbers<[1], [0], [0], [1], [0, 0, 1, 1], [], []>} : vector<8x128xbf16>, vector<128x128xbf16>, vector<8x128xf32> -> vector<8x128xf32>
    %124 = vector.broadcast %122 : vector<1x128xf32> to vector<8x128xf32>
    %125 = arith.addf %123, %124 : vector<8x128xf32>
    %126 = arith.truncf %125 : vector<8x128xf32> to vector<8x128xbf16>
    %127 = math.tanh %126 : vector<8x128xbf16>
    %128 = tpu.iota {dimensions = array<i32: 0>} : vector<8x128xi32>
    %c8_i32_40 = arith.constant 8 : i32
    %129 = arith.muli %arg0, %c8_i32_40 : i32
    %130 = vector.broadcast %129 : i32 to vector<8x128xi32>
    %131 = arith.addi %128, %130 : vector<8x128xi32>
    %132 = tpu.iota {dimensions = array<i32: 1>} : vector<8x128xi32>
    %c-1640531535_i32_41 = arith.constant -1640531535 : i32
    %133 = vector.broadcast %c-1640531535_i32_41 : i32 to vector<8x128xi32>
    %134 = arith.muli %131, %133 : vector<8x128xi32>
    %c-2048144777_i32_42 = arith.constant -2048144777 : i32
    %135 = vector.broadcast %c-2048144777_i32_42 : i32 to vector<8x128xi32>
    %136 = arith.muli %132, %135 : vector<8x128xi32>
    %137 = arith.addi %134, %136 : vector<8x128xi32>
    %c-1915410114_i32 = arith.constant -1915410114 : i32
    %138 = vector.broadcast %c-1915410114_i32 : i32 to vector<8x128xi32>
    %139 = arith.xori %137, %138 : vector<8x128xi32>
    %140 = vector.broadcast %0 : i32 to vector<8x128xi32>
    %141 = arith.xori %139, %140 : vector<8x128xi32>
    %c16_i32_43 = arith.constant 16 : i32
    %142 = vector.broadcast %c16_i32_43 : i32 to vector<8x128xi32>
    %143 = arith.shrui %141, %142 : vector<8x128xi32>
    %144 = arith.xori %141, %143 : vector<8x128xi32>
    %c2146121005_i32_44 = arith.constant 2146121005 : i32
    %145 = vector.broadcast %c2146121005_i32_44 : i32 to vector<8x128xi32>
    %146 = arith.muli %144, %145 : vector<8x128xi32>
    %c15_i32_45 = arith.constant 15 : i32
    %147 = vector.broadcast %c15_i32_45 : i32 to vector<8x128xi32>
    %148 = arith.shrui %146, %147 : vector<8x128xi32>
    %149 = arith.xori %146, %148 : vector<8x128xi32>
    %c-2073254261_i32_46 = arith.constant -2073254261 : i32
    %150 = vector.broadcast %c-2073254261_i32_46 : i32 to vector<8x128xi32>
    %151 = arith.muli %149, %150 : vector<8x128xi32>
    %c16_i32_47 = arith.constant 16 : i32
    %152 = vector.broadcast %c16_i32_47 : i32 to vector<8x128xi32>
    %153 = arith.shrui %151, %152 : vector<8x128xi32>
    %154 = arith.xori %151, %153 : vector<8x128xi32>
    %c-1288490189_i32_48 = arith.constant -1288490189 : i32
    %155 = vector.broadcast %c-1288490189_i32_48 : i32 to vector<8x128xi32>
    %156 = arith.cmpi ult, %154, %155 : vector<8x128xi32>
    %cst_49 = arith.constant 0.000000e+00 : bf16
    %157 = vector.broadcast %cst_49 : bf16 to vector<8x128xbf16>
    %158 = arith.select %156, %127, %157 : vector<8x128xi1>, vector<8x128xbf16>
    %c0_50 = arith.constant 0 : index
    %c0_51 = arith.constant 0 : index
    %159 = vector.load %arg6[%c0_50, %c0_51] : memref<128x384xbf16, #tpu.memory_space<vmem>>, vector<128x384xbf16>
    %160 = vector.extract_strided_slice %2 {offsets = [0, 0], sizes = [1, 384], strides = [1, 1]} : vector<2x384xf32> to vector<1x384xf32>
    %cst_52 = arith.constant dense<0.000000e+00> : vector<8x384xf32>
    %161 = tpu.matmul %158, %159, %cst_52 {dimension_numbers = #tpu.dot_dimension_numbers<[1], [0], [0], [1], [0, 0, 1, 1], [], []>} : vector<8x128xbf16>, vector<128x384xbf16>, vector<8x384xf32> -> vector<8x384xf32>
    %162 = vector.broadcast %160 : vector<1x384xf32> to vector<8x384xf32>
    %163 = arith.addf %161, %162 : vector<8x384xf32>
    %164 = arith.truncf %163 : vector<8x384xf32> to vector<8x384xbf16>
    %165 = math.tanh %164 : vector<8x384xbf16>
    %166 = tpu.iota {dimensions = array<i32: 0>} : vector<8x384xi32>
    %c8_i32_53 = arith.constant 8 : i32
    %167 = arith.muli %arg0, %c8_i32_53 : i32
    %168 = vector.broadcast %167 : i32 to vector<8x384xi32>
    %169 = arith.addi %166, %168 : vector<8x384xi32>
    %170 = tpu.iota {dimensions = array<i32: 1>} : vector<8x384xi32>
    %c-1640531535_i32_54 = arith.constant -1640531535 : i32
    %171 = vector.broadcast %c-1640531535_i32_54 : i32 to vector<8x384xi32>
    %172 = arith.muli %169, %171 : vector<8x384xi32>
    %c-2048144777_i32_55 = arith.constant -2048144777 : i32
    %173 = vector.broadcast %c-2048144777_i32_55 : i32 to vector<8x384xi32>
    %174 = arith.muli %170, %173 : vector<8x384xi32>
    %175 = arith.addi %172, %174 : vector<8x384xi32>
    %c-1247144851_i32 = arith.constant -1247144851 : i32
    %176 = vector.broadcast %c-1247144851_i32 : i32 to vector<8x384xi32>
    %177 = arith.xori %175, %176 : vector<8x384xi32>
    %178 = vector.broadcast %0 : i32 to vector<8x384xi32>
    %179 = arith.xori %177, %178 : vector<8x384xi32>
    %c16_i32_56 = arith.constant 16 : i32
    %180 = vector.broadcast %c16_i32_56 : i32 to vector<8x384xi32>
    %181 = arith.shrui %179, %180 : vector<8x384xi32>
    %182 = arith.xori %179, %181 : vector<8x384xi32>
    %c2146121005_i32_57 = arith.constant 2146121005 : i32
    %183 = vector.broadcast %c2146121005_i32_57 : i32 to vector<8x384xi32>
    %184 = arith.muli %182, %183 : vector<8x384xi32>
    %c15_i32_58 = arith.constant 15 : i32
    %185 = vector.broadcast %c15_i32_58 : i32 to vector<8x384xi32>
    %186 = arith.shrui %184, %185 : vector<8x384xi32>
    %187 = arith.xori %184, %186 : vector<8x384xi32>
    %c-2073254261_i32_59 = arith.constant -2073254261 : i32
    %188 = vector.broadcast %c-2073254261_i32_59 : i32 to vector<8x384xi32>
    %189 = arith.muli %187, %188 : vector<8x384xi32>
    %c16_i32_60 = arith.constant 16 : i32
    %190 = vector.broadcast %c16_i32_60 : i32 to vector<8x384xi32>
    %191 = arith.shrui %189, %190 : vector<8x384xi32>
    %192 = arith.xori %189, %191 : vector<8x384xi32>
    %c-1288490189_i32_61 = arith.constant -1288490189 : i32
    %193 = vector.broadcast %c-1288490189_i32_61 : i32 to vector<8x384xi32>
    %194 = arith.cmpi ult, %192, %193 : vector<8x384xi32>
    %cst_62 = arith.constant 0.000000e+00 : bf16
    %195 = vector.broadcast %cst_62 : bf16 to vector<8x384xbf16>
    %196 = arith.select %194, %165, %195 : vector<8x384xi1>, vector<8x384xbf16>
    %c0_63 = arith.constant 0 : index
    %c0_64 = arith.constant 0 : index
    %197 = vector.load %arg7[%c0_63, %c0_64] : memref<384x384xbf16, #tpu.memory_space<vmem>>, vector<384x384xbf16>
    %198 = vector.extract_strided_slice %2 {offsets = [1, 0], sizes = [1, 384], strides = [1, 1]} : vector<2x384xf32> to vector<1x384xf32>
    %cst_65 = arith.constant dense<0.000000e+00> : vector<8x384xf32>
    %199 = tpu.matmul %196, %197, %cst_65 {dimension_numbers = #tpu.dot_dimension_numbers<[1], [0], [0], [1], [0, 0, 1, 1], [], []>} : vector<8x384xbf16>, vector<384x384xbf16>, vector<8x384xf32> -> vector<8x384xf32>
    %200 = vector.broadcast %198 : vector<1x384xf32> to vector<8x384xf32>
    %201 = arith.addf %199, %200 : vector<8x384xf32>
    %202 = arith.truncf %201 : vector<8x384xf32> to vector<8x384xbf16>
    %203 = tpu.iota {dimensions = array<i32: 0>} : vector<8x384xi32>
    %c8_i32_66 = arith.constant 8 : i32
    %204 = arith.muli %arg0, %c8_i32_66 : i32
    %205 = vector.broadcast %204 : i32 to vector<8x384xi32>
    %206 = arith.addi %203, %205 : vector<8x384xi32>
    %207 = tpu.iota {dimensions = array<i32: 1>} : vector<8x384xi32>
    %c-1640531535_i32_67 = arith.constant -1640531535 : i32
    %208 = vector.broadcast %c-1640531535_i32_67 : i32 to vector<8x384xi32>
    %209 = arith.muli %206, %208 : vector<8x384xi32>
    %c-2048144777_i32_68 = arith.constant -2048144777 : i32
    %210 = vector.broadcast %c-2048144777_i32_68 : i32 to vector<8x384xi32>
    %211 = arith.muli %207, %210 : vector<8x384xi32>
    %212 = arith.addi %209, %211 : vector<8x384xi32>
    %c-578879588_i32 = arith.constant -578879588 : i32
    %213 = vector.broadcast %c-578879588_i32 : i32 to vector<8x384xi32>
    %214 = arith.xori %212, %213 : vector<8x384xi32>
    %215 = vector.broadcast %0 : i32 to vector<8x384xi32>
    %216 = arith.xori %214, %215 : vector<8x384xi32>
    %c16_i32_69 = arith.constant 16 : i32
    %217 = vector.broadcast %c16_i32_69 : i32 to vector<8x384xi32>
    %218 = arith.shrui %216, %217 : vector<8x384xi32>
    %219 = arith.xori %216, %218 : vector<8x384xi32>
    %c2146121005_i32_70 = arith.constant 2146121005 : i32
    %220 = vector.broadcast %c2146121005_i32_70 : i32 to vector<8x384xi32>
    %221 = arith.muli %219, %220 : vector<8x384xi32>
    %c15_i32_71 = arith.constant 15 : i32
    %222 = vector.broadcast %c15_i32_71 : i32 to vector<8x384xi32>
    %223 = arith.shrui %221, %222 : vector<8x384xi32>
    %224 = arith.xori %221, %223 : vector<8x384xi32>
    %c-2073254261_i32_72 = arith.constant -2073254261 : i32
    %225 = vector.broadcast %c-2073254261_i32_72 : i32 to vector<8x384xi32>
    %226 = arith.muli %224, %225 : vector<8x384xi32>
    %c16_i32_73 = arith.constant 16 : i32
    %227 = vector.broadcast %c16_i32_73 : i32 to vector<8x384xi32>
    %228 = arith.shrui %226, %227 : vector<8x384xi32>
    %229 = arith.xori %226, %228 : vector<8x384xi32>
    %c-1288490189_i32_74 = arith.constant -1288490189 : i32
    %230 = vector.broadcast %c-1288490189_i32_74 : i32 to vector<8x384xi32>
    %231 = arith.cmpi ult, %229, %230 : vector<8x384xi32>
    %cst_75 = arith.constant 0.000000e+00 : bf16
    %232 = vector.broadcast %cst_75 : bf16 to vector<8x384xbf16>
    %233 = arith.select %231, %202, %232 : vector<8x384xi1>, vector<8x384xbf16>
    %c0_76 = arith.constant 0 : index
    %c0_77 = arith.constant 0 : index
    %234 = vector.load %arg8[%c0_76, %c0_77] : memref<384x12xbf16, #tpu.memory_space<vmem>>, vector<384x12xbf16>
    %c0_78 = arith.constant 0 : index
    %c0_79 = arith.constant 0 : index
    %235 = vector.load %arg10[%c0_78, %c0_79] : memref<1x12xf32, #tpu.memory_space<vmem>>, vector<1x12xf32>
    %cst_80 = arith.constant dense<0.000000e+00> : vector<8x12xf32>
    %236 = tpu.matmul %233, %234, %cst_80 {dimension_numbers = #tpu.dot_dimension_numbers<[1], [0], [0], [1], [0, 0, 1, 1], [], []>} : vector<8x384xbf16>, vector<384x12xbf16>, vector<8x12xf32> -> vector<8x12xf32>
    %237 = vector.broadcast %235 : vector<1x12xf32> to vector<8x12xf32>
    %238 = arith.addf %236, %237 : vector<8x12xf32>
    %c0_81 = arith.constant 0 : index
    %c0_82 = arith.constant 0 : index
    %239 = vector.load %arg11[%c0_81, %c0_82] : memref<8x12xf32, #tpu.memory_space<vmem>>, vector<8x12xf32>
    tpu.vector_store %arg11[%c0_81, %c0_82], %238 {strides = array<i32>} : memref<8x12xf32, #tpu.memory_space<vmem>>, vector<8x12xf32>,
    return
  }
  func.func @transform_0(%arg0: i32, %arg1: memref<1xi32, #tpu.memory_space<smem>>) -> (i32, i32) {
    %c0_i32 = arith.constant 0 : i32
    %c0_i32_0 = arith.constant 0 : i32
    return %arg0, %c0_i32 : i32, i32
  }
  func.func @transform_1(%arg0: i32, %arg1: memref<1xi32, #tpu.memory_space<smem>>) -> (i32, i32) {
    %c0_i32 = arith.constant 0 : i32
    %c0_i32_0 = arith.constant 0 : i32
    %c0_i32_1 = arith.constant 0 : i32
    return %c0_i32, %c0_i32_0 : i32, i32
  }
  func.func @transform_2(%arg0: i32, %arg1: memref<1xi32, #tpu.memory_space<smem>>) -> (i32, i32, i32) {
    %c0_i32 = arith.constant 0 : i32
    %c0_i32_0 = arith.constant 0 : i32
    %c0_i32_1 = arith.constant 0 : i32
    %c0_i32_2 = arith.constant 0 : i32
    return %c0_i32, %c0_i32_0, %c0_i32_1 : i32, i32, i32
  }
  func.func @transform_3(%arg0: i32, %arg1: memref<1xi32, #tpu.memory_space<smem>>) -> (i32, i32) {
    %c0_i32 = arith.constant 0 : i32
    %c0_i32_0 = arith.constant 0 : i32
    %c0_i32_1 = arith.constant 0 : i32
    return %c0_i32, %c0_i32_0 : i32, i32
  }
  func.func @transform_4(%arg0: i32, %arg1: memref<1xi32, #tpu.memory_space<smem>>) -> (i32, i32) {
    %c0_i32 = arith.constant 0 : i32
    %c0_i32_0 = arith.constant 0 : i32
    %c0_i32_1 = arith.constant 0 : i32
    return %c0_i32, %c0_i32_0 : i32, i32
  }
  func.func @transform_5(%arg0: i32, %arg1: memref<1xi32, #tpu.memory_space<smem>>) -> (i32, i32) {
    %c0_i32 = arith.constant 0 : i32
    %c0_i32_0 = arith.constant 0 : i32
    %c0_i32_1 = arith.constant 0 : i32
    return %c0_i32, %c0_i32_0 : i32, i32
  }
  func.func @transform_6(%arg0: i32, %arg1: memref<1xi32, #tpu.memory_space<smem>>) -> (i32, i32) {
    %c0_i32 = arith.constant 0 : i32
    %c0_i32_0 = arith.constant 0 : i32
    %c0_i32_1 = arith.constant 0 : i32
    return %c0_i32, %c0_i32_0 : i32, i32
  }
  func.func @transform_7(%arg0: i32, %arg1: memref<1xi32, #tpu.memory_space<smem>>) -> (i32, i32) {
    %c0_i32 = arith.constant 0 : i32
    %c0_i32_0 = arith.constant 0 : i32
    %c0_i32_1 = arith.constant 0 : i32
    return %c0_i32, %c0_i32_0 : i32, i32
  }
  func.func @transform_8(%arg0: i32, %arg1: memref<1xi32, #tpu.memory_space<smem>>) -> (i32, i32) {
    %c0_i32 = arith.constant 0 : i32
    %c0_i32_0 = arith.constant 0 : i32
    %c0_i32_1 = arith.constant 0 : i32
    return %c0_i32, %c0_i32_0 : i32, i32
  }
  func.func @transform_9(%arg0: i32, %arg1: memref<1xi32, #tpu.memory_space<smem>>) -> (i32, i32) {
    %c0_i32 = arith.constant 0 : i32
    %c0_i32_0 = arith.constant 0 : i32
    return %arg0, %c0_i32 : i32, i32
  }
}

</mosaic_0001>

<bundles_post_ra>
// kernel: tpu_custom_call.1
= control target key start
LH: loop header
LB: loop body
LE: loop exit
PB: predicated region body
PF: predicated region fallthrough
CT: control target
= control target key end

     0   :  { %16 = vsyncpa [#allocation5], 0  ;;  %s3089_s0 = inlined_call_operand.<no memory space> [shape: s32[1], index: 0, kind: input, shape index: {}]   ;;  %s3090_s1 = inlined_call_operand.vmem [shape: bf16[8,128], index: 1, kind: input, shape index: {}]   ;;  %s3091_s2 = inlined_call_operand.hbm [shape: bf16[128,128], index: 2, kind: input, shape index: {}]   ;;  %s3092_s3 = inlined_call_operand.vmem [shape: bf16[3,128,128], index: 3, kind: input, shape index: {}]   ;;  %s3093_s4 = inlined_call_operand.vmem [shape: f32[4,128], index: 4, kind: input, shape index: {}]   ;;  %s3094_s5 = inlined_call_operand.hbm [shape: bf16[128,384], index: 5, kind: input, shape index: {}]   ;;  %s3095_s6 = inlined_call_operand.hbm [shape: bf16[384,384], index: 6, kind: input, shape index: {}]   ;;  %s3096_s7 = inlined_call_operand.vmem [shape: bf16[384,12], index: 7, kind: input, shape index: {}]   ;;  %s3097_s8 = inlined_call_operand.vmem [shape: f32[2,384], index: 8, kind: input, shape index: {}]   ;;  %s3098_s9 = inlined_call_operand.vmem [shape: f32[1,12], index: 9, kind: input, shape index: {}]   ;;  %s3099_s10 = inlined_call_operand.hbm [shape: f32[8,12], index: 10, kind: output, shape index: {}]  }
   0x1   :  { %17 = vsyncpa [#allocation8], 0 }
   0x2   :  { %18 = vsyncpa [#allocation6], 0  ;;  %s2655_s13 = smov [#allocation7]   ;;  %s2561_s17 = scalar_lea.hbm %s3094_s5, 3072 }
   0x3   :  { %s42_s14 = sshll.u32 %s2655_s13, 4  ;;  %p2562_p0 = scmp.ne.s32.totalorder %s3094_s5, %s2561_s17  ;;  %s43_s14 = int_to_ptr.vmem [resolvable:$true] %s42_s14 }
   0x4   :  { %p2565_p1 = scmp.lt.u32.totalorder %s2561_s17, %s3094_s5 }
   0x6   :  { %p2567_p2 = pnand %p2565_p1, %p2562_p0 }
   0x8   :  { %2570 = shalt.err (!%p2567_p2)
}
   0x9   :  { %s2571_s22 = scalar_lea.vmem %s43_s14, 3072  ;;  %p2576_p4 = scmp.lt.s32.totalorder %s43_s14, %s43_s14 }
   0xa   :  { %p2572_p3 = scmp.ne.s32.totalorder %s43_s14, %s2571_s22  ;;  %p2577_p5 = scmp.lt.s32.totalorder %s2571_s22, %s2571_s22 }
   0xc   :  { %p2578_p6 = por %p2577_p5, %p2576_p4 }
   0xe   :  { %p2579_p7 = pnand %p2578_p6, %p2572_p3 }
  0x10   :  { %2582 = shalt.err (!%p2579_p7)
}
  0x11   :  { %s2656_s23 = smov 192   ;;  %s2657_s24 = smov 12  }
  0x12   :  { %48 = dma.hbm_to_vmem [thread:$0]  %s3094_s5, 3072, %s43_s14, [#allocation8], %s2656_s23, %s2656_s23, %s2657_s24  }
  0x13   :  { %s2658_s27 = smov [#allocation4]   ;;  %s2583_s11 = scalar_lea.hbm %s3091_s2, 1024 }
  0x14   :  { %s26_s28 = sshll.u32 %s2658_s27, 4  ;;  %p2584_p8 = scmp.ne.s32.totalorder %s3091_s2, %s2583_s11  ;;  %s27_s28 = int_to_ptr.vmem [resolvable:$true] %s26_s28 }
  0x15   :  { %p2587_p9 = scmp.lt.u32.totalorder %s2583_s11, %s3091_s2 }
  0x17   :  { %p2589_p10 = pnand %p2587_p9, %p2584_p8 }
  0x19   :  { %2592 = shalt.err (!%p2589_p10)
}
  0x1a   :  { %s2593_s17 = scalar_lea.vmem %s27_s28, 1024  ;;  %p2598_p12 = scmp.lt.s32.totalorder %s27_s28, %s27_s28 }
  0x1b   :  { %p2594_p11 = scmp.ne.s32.totalorder %s27_s28, %s2593_s17  ;;  %p2599_p13 = scmp.lt.s32.totalorder %s2593_s17, %s2593_s17 }
  0x1d   :  { %p2600_p0 = por %p2599_p13, %p2598_p12 }
  0x1f   :  { %p2601_p1 = pnand %p2600_p0, %p2594_p11 }
  0x21   :  { %2604 = shalt.err (!%p2601_p1)
}
  0x22   :  { %s2659_s5 = smov 64   ;;  %s2660_s14 = smov 4  }
  0x23   :  { %32 = dma.hbm_to_vmem [thread:$0]  %s3091_s2, 1024, %s27_s28, [#allocation5], %s2659_s5, %s2659_s5, %s2660_s14  }
  0x24   :  { %s2661_s20 = smov [#allocation9]   ;;  %s2605_s26 = scalar_lea.hbm %s3095_s6, 9216 }
  0x25   :  { %s54_s21 = sshll.u32 %s2661_s20, 4  ;;  %p2606_p2 = scmp.ne.s32.totalorder %s3095_s6, %s2605_s26  ;;  %s55_s21 = int_to_ptr.vmem [resolvable:$true] %s54_s21 }
  0x26   :  { %p2609_p3 = scmp.lt.u32.totalorder %s2605_s26, %s3095_s6 }
  0x28   :  { %p2611_p4 = pnand %p2609_p3, %p2606_p2 }
  0x2a   :  { %2614 = shalt.err (!%p2611_p4)
}
  0x2b   :  { %s2615_s12 = scalar_lea.vmem %s55_s21, 9216  ;;  %p2620_p6 = scmp.lt.s32.totalorder %s55_s21, %s55_s21 }
  0x2c   :  { %p2616_p5 = scmp.ne.s32.totalorder %s55_s21, %s2615_s12  ;;  %p2621_p7 = scmp.lt.s32.totalorder %s2615_s12, %s2615_s12 }
  0x2e   :  { %p2622_p8 = por %p2621_p7, %p2620_p6 }
  0x30   :  { %p2623_p9 = pnand %p2622_p8, %p2616_p5 }
  0x32   :  { %2626 = shalt.err (!%p2623_p9)
}
  0x33   :  { %60 = dma.hbm_to_vmem [thread:$0]  %s3095_s6, 9216, %s55_s21, [#allocation8], %s2656_s23, %s2656_s23, %s2657_s24  }
  0x34   :  { %2649 = dma.done.wait [#allocation5], 1024  }
  0x35   :  { %2650 = vsyncadd [#allocation5], 4294966272 }
  0x36   :  { %2651 = dma.done.wait [#allocation8], 12288  }
  0x37   :  { %2652 = vsyncadd [#allocation8], 4294955008  ;;  %v2662_v0 = vmov 0.0   ;;  %vm2663_vm0 = vmmov 0   ;;  %v2363_v1 = vld [vmem:[#allocation4] sm:$0xff]   ;;  %v2364_v2 = vld [vmem:[#allocation4 + $0x8] sm:$0xff]   ;;  %v97_v22 = vlaneseq  ;;  %v2845_v29 = vstv %s3089_s0 }
  0x38   :  { %2206 = vmatprep.subr.bf16.mxu0 %v2662_v0  ;;  %2222 = vmatprep.mubr.msk.bf16.mxu0 %vm2663_vm0, %v2662_v0  ;;  %v2365_v3 = vld [vmem:[#allocation4 + $0x10] sm:$0xff]   ;;  %v2371_v4 = vld [vmem:[%s3092_s3] sm:$0xff]   ;;  %v2366_v5 = vld [vmem:[#allocation4 + $0x18] sm:$0xff]   ;;  %s2665_s28 = smov [#allocation10]  }
  0x39   :  { %2226 = vmatprep.subr.bf16.mxu1 %v2662_v0  ;;  %2242 = vmatprep.mubr.msk.bf16.mxu1 %vm2663_vm0, %v2662_v0  ;;  %v2372_v6 = vld [vmem:[%s3092_s3 + $0x8] sm:$0xff]   ;;  %v2367_v7 = vld [vmem:[#allocation4 + $0x20] sm:$0xff]   ;;  %v2373_v8 = vld [vmem:[%s3092_s3 + $0x10] sm:$0xff]   ;;  %v2830_v23 = vshrl.u32 %v97_v22, 7  ;;  %v2832_v24 = vand.u32 127, %v97_v22  ;;  %s1904_s6 = sshll.u32 %s2665_s28, 4  ;;  %s1905_s6 = int_to_ptr.vmem [resolvable:$true] %s1904_s6 }
  0x3a   :  { %2207 = vmatpush3.bf16.msra.mxu0 %v2363_v1  ;;  %2227 = vmatpush3.bf16.msra.mxu1 %v2371_v4  ;;  %v2368_v9 = vld [vmem:[#allocation4 + $0x28] sm:$0xff]   ;;  %v2374_v10 = vld [vmem:[%s3092_s3 + $0x18] sm:$0xff]   ;;  %v2369_v11 = vld [vmem:[#allocation4 + $0x30] sm:$0xff]   ;;  %s2627_s23 = scalar_lea.vmem %s1905_s6, 128  ;;  %p2632_p11 = scmp.lt.s32.totalorder %s1905_s6, %s1905_s6 }
  0x3b   :  { %2208 = vmatprep.subr.bf16.mxu0 %v2662_v0  ;;  %2228 = vmatprep.subr.bf16.mxu1 %v2662_v0  ;;  %v2370_v12 = vld [vmem:[#allocation4 + $0x38] sm:$0xff]   ;;  %v80_v13 = vld [vmem:[%s3090_s1] sm:$0xf]  ;;  %v2376_v15 = vld [vmem:[%s3092_s3 + $0x28] sm:$0xff]   ;;  %v2835_v25 = vmul.u32 2654435761, %v2830_v23  ;;  %p2628_p10 = scmp.ne.s32.totalorder %s1905_s6, %s2627_s23  ;;  %p2633_p12 = scmp.lt.s32.totalorder %s2627_s23, %s2627_s23 }
  0x3c   :  { %v2375_v14 = vld [vmem:[%s3092_s3 + $0x20] sm:$0xff]   ;;  %v2377_v16 = vld [vmem:[%s3092_s3 + $0x30] sm:$0xff]   ;;  %v2378_v17 = vld [vmem:[%s3092_s3 + $0x38] sm:$0xff]   ;;  %v199_v26 = vmul.u32 2246822519, %v2832_v24  ;;  %v2849_v35 = vsub.s32 0, %v2830_v23 }
  0x3d   :  { %v2379_v18 = vld [vmem:[%s3092_s3 + $0x40] sm:$0xff]   ;;  %v2380_v19 = vld [vmem:[%s3092_s3 + $0x48] sm:$0xff]   ;;  %v2381_v20 = vld [vmem:[%s3092_s3 + $0x50] sm:$0xff]   ;;  %v2894_v1 = vsub.s32 1, %v2830_v23  ;;  %p2634_p13 = por %p2633_p12, %p2632_p11 }
  0x3e   :  { %2209 = vmatpush3.bf16.msra.mxu0 %v2364_v2  ;;  %2229 = vmatpush3.bf16.msra.mxu1 %v2372_v6  ;;  %v2382_v21 = vld [vmem:[%s3092_s3 + $0x58] sm:$0xff]   ;;  %v2839_v27 = vadd.s32 %v199_v26, %v2835_v25  ;;  %v2854_v36 = vld [vmem:[%s3093_s4] sm:$0xf]  ;;  %v2384_v51 = vld [vmem:[%s3092_s3 + $0x68] sm:$0xff]  }
  0x3f   :  { %2210 = vmatprep.subr.bf16.mxu0 %v2662_v0  ;;  %2230 = vmatprep.subr.bf16.mxu1 %v2662_v0  ;;  %v100_v38 = vrot.slane %v2854_v36, %v2849_v35  ;;  %v2383_v50 = vld [vmem:[%s3092_s3 + $0x60] sm:$0xff]   ;;  %v2385_v52 = vld [vmem:[%s3092_s3 + $0x70] sm:$0xff]   ;;  %v2386_v53 = vld [vmem:[%s3092_s3 + $0x78] sm:$0xff]   ;;  %p2635_p0 = pnand %p2634_p13, %p2628_p10 }
  0x40   :  { %v201_v28 = vxor.u32 374761393, %v2839_v27  ;;  %v2387_v54 = vld [vmem:[%s3092_s3 + $0x80] sm:$0xff]   ;;  %v2388_v55 = vld [vmem:[%s3092_s3 + $0x88] sm:$0xff]   ;;  %v2389_v56 = vld [vmem:[%s3092_s3 + $0x90] sm:$0xff]  }
  0x41   :  { %v2390_v57 = vld [vmem:[%s3092_s3 + $0x98] sm:$0xff]   ;;  %v325_v58 = vxor.u32 1043026656, %v2839_v27  ;;  %v2405_v26 = vld [vmem:[#allocation7 + $0x34] ss:$12 sps:$4 sm:$0xff]  }
  0x42   :  { %2211 = vmatpush3.bf16.msra.mxu0 %v2365_v3  ;;  %2231 = vmatpush3.bf16.msra.mxu1 %v2373_v8  ;;  %v203_v30 = vxor.u32 %v2845_v29, %v201_v28  ;;  %v234_v3 = vrot.slane %v2854_v36, %v2894_v1  ;;  %v2399_v22 = vld [vmem:[#allocation7 + $0x18] ss:$12 sps:$4 sm:$0xff]   ;;  %v2403_v28 = vld [vmem:[#allocation7 + $0x30] ss:$12 sps:$4 sm:$0xff]  }
  0x43   :  { %2212 = vmatprep.subr.bf16.mxu0 %v2662_v0  ;;  %2232 = vmatprep.subr.bf16.mxu1 %v2662_v0  ;;  %v326_v59 = vxor.u32 %v325_v58, %v2845_v29  ;;  %v2413_v58 = vld [vmem:[#allocation7 + $0x64] ss:$12 sps:$4 sm:$0xff]  }
  0x44   :  { %v204_v31 = vshrl.u32 %v203_v30, 16 }
  0x45   :  { %v327_v60 = vshrl.u32 %v326_v59, 16 }
  0x46   :  { %2213 = vmatpush3.bf16.msra.mxu0 %v2366_v5  ;;  %2233 = vmatpush3.bf16.msra.mxu1 %v2374_v10  ;;  %v205_v32 = vxor.u32 %v204_v31, %v203_v30  ;;  %v2409_v30 = vld [vmem:[#allocation7 + $0x4c] ss:$12 sps:$4 sm:$0xff]   ;;  %v2407_v31 = vld [vmem:[#allocation7 + $0x48] ss:$12 sps:$4 sm:$0xff]  }
  0x47   :  { %2214 = vmatprep.subr.bf16.mxu0 %v2662_v0  ;;  %2234 = vmatprep.subr.bf16.mxu1 %v2662_v0  ;;  %v328_v61 = vxor.u32 %v327_v60, %v326_v59  ;;  %v2411_v59 = vld [vmem:[#allocation7 + $0x60] ss:$12 sps:$4 sm:$0xff]   ;;  %v2414_v60 = vld [vmem:[#allocation7 + $0x68] ss:$12 sps:$4 sm:$0xff]  }
  0x48   :  { %v206_v33 = vmul.u32 2146121005, %v205_v32  ;;  %v449_v32 = vxor.u32 1711291919, %v2839_v27 }
  0x49   :  { %v329_v62 = vmul.u32 2146121005, %v328_v61  ;;  %v2417_v61 = vld [vmem:[#allocation7 + $0x7c] ss:$12 sps:$4 sm:$0xff]  }
  0x4a   :  { %2215 = vmatpush3.bf16.msra.mxu0 %v2367_v7  ;;  %2235 = vmatpush3.bf16.msra.mxu1 %v2375_v14  ;;  %v207_v34 = vshrl.u32 %v206_v33, 15 }
  0x4b   :  { %2216 = vmatprep.subr.bf16.mxu0 %v2662_v0  ;;  %2236 = vmatprep.subr.bf16.mxu1 %v2662_v0  ;;  %v330_v63 = vshrl.u32 %v329_v62, 15 }
  0x4c   :  { %v208_v37 = vxor.u32 %v207_v34, %v206_v33  ;;  %v450_v33 = vxor.u32 %v449_v32, %v2845_v29 }
  0x4d   :  { %v331_v2 = vxor.u32 %v330_v63, %v329_v62  ;;  %v2415_v62 = vld [vmem:[#allocation7 + $0x78] ss:$12 sps:$4 sm:$0xff]   ;;  %v2418_v63 = vld [vmem:[#allocation7 + $0x80] ss:$12 sps:$4 sm:$0xff]  }
  0x4e   :  { %2217 = vmatpush3.bf16.msra.mxu0 %v2368_v9  ;;  %2237 = vmatpush3.bf16.msra.mxu1 %v2376_v15  ;;  %v209_v39 = vmul.u32 2221713035, %v208_v37  ;;  %v2391_v15 = vld [vmem:[%s3092_s3 + $0xa0] sm:$0xff]   ;;  %v451_v34 = vshrl.u32 %v450_v33, 16 }
  0x4f   :  { %2218 = vmatprep.subr.bf16.mxu0 %v2662_v0  ;;  %2238 = vmatprep.subr.bf16.mxu1 %v2662_v0  ;;  %v332_v4 = vmul.u32 2221713035, %v331_v2  ;;  %v2421_v2 = vld [vmem:[#allocation7 + $0x94] ss:$12 sps:$4 sm:$0xff]  }
  0x50   :  { %v210_v46 = vshrl.u32 %v209_v39, 16  ;;  %v452_v37 = vxor.u32 %v451_v34, %v450_v33  ;;  %v2427_v34 = vld [vmem:[#allocation9] ss:$12 sps:$4 sm:$0xff]  }
  0x52   :  { %2219 = vmatpush3.bf16.msra.mxu0 %v2369_v11  ;;  %2239 = vmatpush3.bf16.msra.mxu1 %v2377_v16  ;;  %v211_v47 = vxor.u32 %v210_v46, %v209_v39  ;;  %v333_v11 = vshrl.u32 %v332_v4, 16  ;;  %v2392_v16 = vld [vmem:[%s3092_s3 + $0xa8] sm:$0xff]  }
  0x53   :  { %2220 = vmatprep.subr.bf16.mxu0 %v2662_v0  ;;  %2240 = vmatprep.subr.bf16.mxu1 %v2662_v0 }
  0x54   :  { %vm212_vm1 = vcmp.lt.u32.totalorder %v211_v47, 3006477107 }
  0x55   :  { %vm213_vm2 = vmpackc.low %vm212_vm1, %vm212_vm1 }
  0x56   :  { %2221 = vmatpush3.bf16.msra.mxu0 %v2370_v12  ;;  %2241 = vmatpush3.bf16.msra.mxu1 %v2378_v17  ;;  %v334_v12 = vxor.u32 %v333_v11, %v332_v4  ;;  %v2393_v17 = vld [vmem:[%s3092_s3 + $0xb0] sm:$0xff]   ;;  %v2422_v4 = vld [vmem:[#allocation7 + $0x98] ss:$12 sps:$4 sm:$0xff]   ;;  %v573_v11 = vxor.u32 2379557182, %v2839_v27 }
  0x57   :  { %2246 = vmatprep.subr.bf16.mxu0 %v2662_v0  ;;  %2266 = vmatprep.subr.bf16.mxu1 %v2662_v0 }
  0x58   :  { %vm335_vm3 = vcmp.lt.u32.totalorder %v334_v12, 3006477107  ;;  %v574_v12 = vxor.u32 %v573_v11, %v2845_v29  ;;  %v2478_v11 = vld [vmem:[#allocation9 + $0x13c] ss:$12 sps:$4 sm:$0xff]  }
  0x59   :  { %2223 = vmatmul.mubr.bf16.vlgmr.msra.gmra.mrb[0].mxu0 %v80_v13  ;;  %vm336_vm4 = vmpackc.low %vm335_vm3, %vm335_vm3 }
  0x5a   :  { %2262 = vmatprep.mubr.msk.bf16.mxu0 %vm2663_vm0, %v2662_v0  ;;  %2247 = vmatpush3.bf16.msra.mxu0 %v2379_v18  ;;  %v2394_v18 = vld [vmem:[%s3092_s3 + $0xb8] sm:$0xff]  }
  0x5b   :  { %2248 = vmatprep.subr.bf16.mxu0 %v2662_v0 }
  0x5e   :  { %2249 = vmatpush3.bf16.msra.mxu0 %v2380_v19  ;;  %v2395_v19 = vld [vmem:[#allocation7] ss:$12 sps:$4 sm:$0xff]  }
  0x5f   :  { %2250 = vmatprep.subr.bf16.mxu0 %v2662_v0 }
  0x62   :  { %2251 = vmatpush3.bf16.msra.mxu0 %v2381_v20  ;;  %v2397_v20 = vld [vmem:[#allocation7 + $0x4] ss:$12 sps:$4 sm:$0xff]  }
  0x63   :  { %2252 = vmatprep.subr.bf16.mxu0 %v2662_v0 }
  0x66   :  { %2253 = vmatpush3.bf16.msra.mxu0 %v2382_v21  ;;  %v2401_v21 = vld [vmem:[#allocation7 + $0x1c] ss:$12 sps:$4 sm:$0xff]  }
  0x67   :  { %2254 = vmatprep.subr.bf16.mxu0 %v2662_v0 }
  0x6a   :  { %2255 = vmatpush3.bf16.msra.mxu0 %v2383_v50 }
  0x6b   :  { %2256 = vmatprep.subr.bf16.mxu0 %v2662_v0 }
  0x6e   :  { %2257 = vmatpush3.bf16.msra.mxu0 %v2384_v51 }
  0x6f   :  { %2258 = vmatprep.subr.bf16.mxu0 %v2662_v0 }
  0x72   :  { %2259 = vmatpush3.bf16.msra.mxu0 %v2385_v52  ;;  %v2398_v52 = vld [vmem:[#allocation7 + $0x8] ss:$12 sps:$4 sm:$0xff]  }
  0x73   :  { %2260 = vmatprep.subr.bf16.mxu0 %v2662_v0 }
  0x76   :  { %2261 = vmatpush3.bf16.msra.mxu0 %v2386_v53 }
  0x77   :  { %774 = vmatprep.subr.bf16.mxu0 %v2397_v20 }
 0x12c   :  { %v183_v40 = vpop.f32.mrb[0].mxu0 }
 0x12d   :  { %v184_v41 = vadd.f32 %v183_v40, %v100_v38  ;;  %v2224_v42 = vpop.f32.mrb[1].mxu0  ;;  %v453_v38 = vmul.u32 2146121005, %v452_v37  ;;  %v357_v40 = vsub.s32 2, %v2830_v23  ;;  %v2455_v37 = vld [vmem:[#allocation9 + $0x8] ss:$12 sps:$4 sm:$0xff]  }
 0x12e   :  { %v186_v43 = vpop.f32.mrb[2].mxu0 }
 0x12f   :  { %v189_v44 = vpack.c.bf16 %v184_v41, %v184_v41  ;;  %v2225_v45 = vpop.f32.mrb[3].mxu0  ;;  %v454_v39 = vshrl.u32 %v453_v38, 15  ;;  %v358_v42 = vrot.slane %v2854_v36, %v357_v40 }
 0x131   :  { %2547 = vtanh.bf16 %v189_v44  ;;  %v455_v41 = vxor.u32 %v454_v39, %v453_v38  ;;  %v2432_v39 = vld [vmem:[#allocation9 + $0x1c] ss:$12 sps:$4 sm:$0xff]  }
 0x133   :  { %v456_v43 = vmul.u32 2221713035, %v455_v41  ;;  %v2459_v41 = vld [vmem:[#allocation9 + $0xe0] ss:$12 sps:$4 sm:$0xff]  }
 0x135   :  { %v457_v50 = vshrl.u32 %v456_v43, 16 }
 0x137   :  { %v458_v51 = vxor.u32 %v457_v50, %v456_v43  ;;  %v2460_v43 = vld [vmem:[#allocation9 + $0x20] ss:$12 sps:$4 sm:$0xff]   ;;  %v2436_v50 = vld [vmem:[#allocation9 + $0x48] ss:$12 sps:$4 sm:$0xff]  }
 0x139   :  { %vm459_vm5 = vcmp.lt.u32.totalorder %v458_v51, 3006477107  ;;  %v2441_v51 = vld [vmem:[#allocation9 + $0x64] ss:$12 sps:$4 sm:$0xff]  }
 0x13a   :  { %vm460_vm6 = vmpackc.low %vm459_vm5, %vm459_vm5  ;;  %vm1896_vm5 = vcmask 97280  }
 0x13c   :  { %v2548_v48 = vpop.eup %2547 }
 0x13d   :  { %v214_v49 = vsel %vm213_vm2, %v2548_v48, 0 }
 0x13e   :  { %2243 = vmatmul.mubr.bf16.vlgmr.msra.gmra.mrb[0].mxu1 %v214_v49 }
 0x13f   :  { %2282 = vmatprep.mubr.msk.bf16.mxu1 %vm2663_vm0, %v2662_v0  ;;  %2267 = vmatpush3.bf16.msra.mxu1 %v2387_v54 }
 0x140   :  { %2268 = vmatprep.subr.bf16.mxu1 %v2662_v0 }
 0x143   :  { %2269 = vmatpush3.bf16.msra.mxu1 %v2388_v55  ;;  %v2402_v55 = vld [vmem:[#allocation7 + $0x20] ss:$12 sps:$4 sm:$0xff]  }
 0x144   :  { %2270 = vmatprep.subr.bf16.mxu1 %v2662_v0 }
 0x147   :  { %2271 = vmatpush3.bf16.msra.mxu1 %v2389_v56  ;;  %v2406_v56 = vld [vmem:[#allocation7 + $0x38] ss:$12 sps:$4 sm:$0xff]  }
 0x148   :  { %2272 = vmatprep.subr.bf16.mxu1 %v2662_v0 }
 0x14b   :  { %2273 = vmatpush3.bf16.msra.mxu1 %v2390_v57  ;;  %v2410_v57 = vld [vmem:[#allocation7 + $0x50] ss:$12 sps:$4 sm:$0xff]  }
 0x14c   :  { %2274 = vmatprep.subr.bf16.mxu1 %v2662_v0 }
 0x14f   :  { %2275 = vmatpush3.bf16.msra.mxu1 %v2391_v15 }
 0x150   :  { %2276 = vmatprep.subr.bf16.mxu1 %v2662_v0 }
 0x153   :  { %2277 = vmatpush3.bf16.msra.mxu1 %v2392_v16 }
 0x154   :  { %2278 = vmatprep.subr.bf16.mxu1 %v2662_v0 }
 0x157   :  { %2279 = vmatpush3.bf16.msra.mxu1 %v2393_v17  ;;  %v481_v17 = vsub.s32 3, %v2830_v23 }
 0x158   :  { %2280 = vmatprep.subr.bf16.mxu1 %v2662_v0 }
 0x15b   :  { %2281 = vmatpush3.bf16.msra.mxu1 %v2394_v18 }
 0x15c   :  { %2286 = vmatprep.subr.bf16.mxu1 %v2662_v0 }
 0x211   :  { %v317_v5 = vpop.f32.mrb[0].mxu1 }
 0x212   :  { %v318_v6 = vadd.f32 %v317_v5, %v234_v3  ;;  %v2244_v7 = vpop.f32.mrb[1].mxu1  ;;  %v2419_v3 = vld [vmem:[#allocation7 + $0x90] ss:$12 sps:$4 sm:$0xff]   ;;  %v2425_v5 = vld [vmem:[#allocation7 + $0xac] ss:$12 sps:$4 sm:$0xff]  }
 0x213   :  { %v320_v8 = vpop.f32.mrb[2].mxu1  ;;  %v2423_v7 = vld [vmem:[#allocation7 + $0xa8] ss:$12 sps:$4 sm:$0xff]  }
 0x214   :  { %v323_v9 = vpack.c.bf16 %v318_v6, %v318_v6  ;;  %v2245_v10 = vpop.f32.mrb[3].mxu1  ;;  %v2664_v6 = vmov 0   ;;  %v2426_v8 = vld [vmem:[#allocation7 + $0xb0] ss:$12 sps:$4 sm:$0xff]  }
 0x215   :  { %v2454_v10 = vld [vmem:[#allocation9 + $0xc8] ss:$12 sps:$4 sm:$0xff]  }
 0x216   :  { %2549 = vtanh.bf16 %v323_v9  ;;  %v2429_v9 = vld [vmem:[#allocation9 + $0x4] ss:$12 sps:$4 sm:$0xff]  }
 0x221   :  { %v2550_v13 = vpop.eup %2549 }
 0x222   :  { %v337_v14 = vsel %vm336_vm4, %v2550_v13, 0  ;;  %v575_v13 = vshrl.u32 %v574_v12, 16 }
 0x223   :  { %2263 = vmatmul.mubr.bf16.vlgmr.msra.gmra.mrb[4].mxu0 %v337_v14 }
 0x224   :  { %775 = vmatpush1.bf16.msra.mxu0 %v2395_v19  ;;  %806 = vmatprep.mubr.bf16.mxu0 %v2664_v6  ;;  %v576_v14 = vxor.u32 %v575_v13, %v574_v12  ;;  %v482_v19 = vrot.slane %v2854_v36, %v481_v17  ;;  %v2430_v36 = vld [vmem:[#allocation9 + $0x18] ss:$12 sps:$4 sm:$0xff]   ;;  %v2479_v12 = vld [vmem:[#allocation9 + $0x140] ss:$12 sps:$4 sm:$0xff]  }
 0x225   :  { %776 = vmatprep.subr.bf16.mxu0 %v2401_v21  ;;  %v2476_v13 = vld [vmem:[#allocation9 + $0x138] ss:$12 sps:$4 sm:$0xff]  }
 0x226   :  { %v577_v15 = vmul.u32 2146121005, %v576_v14  ;;  %v2480_v14 = vld [vmem:[#allocation9 + $0x80] ss:$12 sps:$4 sm:$0xff]  }
 0x228   :  { %777 = vmatpush1.bf16.msra.mxu0 %v2399_v22  ;;  %v578_v16 = vshrl.u32 %v577_v15, 15 }
 0x229   :  { %778 = vmatprep.subr.bf16.mxu0 %v2405_v26 }
 0x22a   :  { %v579_v18 = vxor.u32 %v578_v16, %v577_v15  ;;  %v2483_v15 = vld [vmem:[#allocation9 + $0x154] ss:$12 sps:$4 sm:$0xff]   ;;  %v2484_v16 = vld [vmem:[#allocation9 + $0x158] ss:$12 sps:$4 sm:$0xff]  }
 0x22c   :  { %779 = vmatpush1.bf16.msra.mxu0 %v2403_v28  ;;  %v580_v20 = vmul.u32 2221713035, %v579_v18  ;;  %v2481_v18 = vld [vmem:[#allocation9 + $0x150] ss:$12 sps:$4 sm:$0xff]  }
 0x22d   :  { %780 = vmatprep.subr.bf16.mxu0 %v2409_v30 }
 0x22e   :  { %v581_v32 = vshrl.u32 %v580_v20, 16 }
 0x230   :  { %781 = vmatpush1.bf16.msra.mxu0 %v2407_v31  ;;  %v582_v33 = vxor.u32 %v581_v32, %v580_v20  ;;  %v2488_v20 = vld [vmem:[#allocation9 + $0x16c] ss:$12 sps:$4 sm:$0xff]  }
 0x231   :  { %782 = vmatprep.subr.bf16.mxu0 %v2413_v58  ;;  %v2448_v58 = vld [vmem:[#allocation9 + $0xa8] ss:$12 sps:$4 sm:$0xff]  }
 0x232   :  { %vm583_vm7 = vcmp.lt.u32.totalorder %v582_v33, 3006477107 }
 0x233   :  { %vm584_vm8 = vmpackc.low %vm583_vm7, %vm583_vm7 }
 0x234   :  { %783 = vmatpush1.bf16.msra.mxu0 %v2411_v59  ;;  %v2453_v59 = vld [vmem:[#allocation9 + $0xc4] ss:$12 sps:$4 sm:$0xff]  }
 0x235   :  { %784 = vmatprep.subr.bf16.mxu0 %v2417_v61  ;;  %v2458_v61 = vld [vmem:[#allocation9 + $0xdc] ss:$12 sps:$4 sm:$0xff]  }
 0x238   :  { %785 = vmatpush1.bf16.msra.mxu0 %v2415_v62  ;;  %v2456_v62 = vld [vmem:[#allocation9 + $0xd8] ss:$12 sps:$4 sm:$0xff]  }
 0x239   :  { %786 = vmatprep.subr.bf16.mxu0 %v2421_v2  ;;  %v2461_v2 = vld [vmem:[#allocation9 + $0xf0] ss:$12 sps:$4 sm:$0xff]  }
 0x23c   :  { %787 = vmatpush1.bf16.msra.mxu0 %v2419_v3  ;;  %v2468_v3 = vld [vmem:[#allocation9 + $0x10c] ss:$12 sps:$4 sm:$0xff]  }
 0x23d   :  { %788 = vmatprep.subr.bf16.mxu0 %v2425_v5  ;;  %v2470_v5 = vld [vmem:[#allocation9 + $0x50] ss:$12 sps:$4 sm:$0xff]  }
 0x240   :  { %789 = vmatpush1.bf16.msra.mxu0 %v2423_v7  ;;  %v2473_v7 = vld [vmem:[#allocation9 + $0x124] ss:$12 sps:$4 sm:$0xff]  }
 0x241   :  { %1413 = vmatprep.subr.bf16.mxu0 %v2429_v9  ;;  %v2471_v9 = vld [vmem:[#allocation9 + $0x120] ss:$12 sps:$4 sm:$0xff]  }
 0x2f6   :  { %v441_v44 = vpop.f32.mrb[4].mxu0 }
 0x2f7   :  { %v442_v45 = vadd.f32 %v441_v44, %v358_v42  ;;  %v2264_v46 = vpop.f32.mrb[5].mxu0  ;;  %v2435_v44 = vld [vmem:[#allocation9 + $0x34] ss:$12 sps:$4 sm:$0xff]  }
 0x2f8   :  { %v444_v47 = vpop.f32.mrb[6].mxu0  ;;  %v2433_v46 = vld [vmem:[#allocation9 + $0x30] ss:$12 sps:$4 sm:$0xff]  }
 0x2f9   :  { %v447_v48 = vpack.c.bf16 %v442_v45, %v442_v45  ;;  %v2265_v49 = vpop.f32.mrb[7].mxu0  ;;  %v2464_v45 = vld [vmem:[#allocation9 + $0xf8] ss:$12 sps:$4 sm:$0xff]  }
 0x2fa   :  { %v2465_v47 = vld [vmem:[#allocation9 + $0x38] ss:$12 sps:$4 sm:$0xff]   ;;  %v2469_v49 = vld [vmem:[#allocation9 + $0x110] ss:$12 sps:$4 sm:$0xff]  }
 0x2fb   :  { %2551 = vtanh.bf16 %v447_v48  ;;  %v2438_v48 = vld [vmem:[#allocation9 + $0x4c] ss:$12 sps:$4 sm:$0xff]  }
 0x306   :  { %v2552_v53 = vpop.eup %2551 }
 0x307   :  { %v461_v54 = vsel %vm460_vm6, %v2552_v53, 0  ;;  %v2444_v53 = vld [vmem:[#allocation9 + $0x7c] ss:$12 sps:$4 sm:$0xff]  }
 0x308   :  { %2283 = vmatmul.mubr.bf16.vlgmr.msra.gmra.mrb[4].mxu1 %v461_v54  ;;  %v2442_v54 = vld [vmem:[#allocation9 + $0x78] ss:$12 sps:$4 sm:$0xff]  }
 0x309   :  { %2287 = vmatpush3.bf16.msra.mxu1 %v2398_v52  ;;  %2302 = vmatprep.mubr.msk.bf16.mxu1 %vm2663_vm0, %v2662_v0  ;;  %v2439_v52 = vld [vmem:[#allocation9 + $0x60] ss:$12 sps:$4 sm:$0xff]  }
 0x30a   :  { %2288 = vmatprep.subr.bf16.mxu1 %v2662_v0 }
 0x30d   :  { %2289 = vmatpush3.bf16.msra.mxu1 %v2402_v55  ;;  %v2447_v55 = vld [vmem:[#allocation9 + $0x94] ss:$12 sps:$4 sm:$0xff]  }
 0x30e   :  { %2290 = vmatprep.subr.bf16.mxu1 %v2662_v0 }
 0x311   :  { %2291 = vmatpush3.bf16.msra.mxu1 %v2406_v56  ;;  %v2445_v56 = vld [vmem:[#allocation9 + $0x90] ss:$12 sps:$4 sm:$0xff]  }
 0x312   :  { %2292 = vmatprep.subr.bf16.mxu1 %v2662_v0 }
 0x315   :  { %2293 = vmatpush3.bf16.msra.mxu1 %v2410_v57  ;;  %v2450_v57 = vld [vmem:[#allocation9 + $0xac] ss:$12 sps:$4 sm:$0xff]  }
 0x316   :  { %2294 = vmatprep.subr.bf16.mxu1 %v2662_v0 }
 0x319   :  { %2295 = vmatpush3.bf16.msra.mxu1 %v2414_v60  ;;  %v2451_v60 = vld [vmem:[#allocation9 + $0xc0] ss:$12 sps:$4 sm:$0xff]  }
 0x31a   :  { %2296 = vmatprep.subr.bf16.mxu1 %v2662_v0 }
 0x31d   :  { %2297 = vmatpush3.bf16.msra.mxu1 %v2418_v63  ;;  %v2463_v63 = vld [vmem:[#allocation9 + $0xf4] ss:$12 sps:$4 sm:$0xff]  }
 0x31e   :  { %2298 = vmatprep.subr.bf16.mxu1 %v2662_v0 }
 0x321   :  { %2299 = vmatpush3.bf16.msra.mxu1 %v2422_v4  ;;  %v2466_v4 = vld [vmem:[#allocation9 + $0x108] ss:$12 sps:$4 sm:$0xff]  }
 0x322   :  { %2300 = vmatprep.subr.bf16.mxu1 %v2662_v0 }
 0x325   :  { %2301 = vmatpush3.bf16.msra.mxu1 %v2426_v8  ;;  %v2474_v8 = vld [vmem:[#allocation9 + $0x128] ss:$12 sps:$4 sm:$0xff]  }
 0x326   :  { %2144 = vmatprep.subr.bf16.mxu1 %v2454_v10  ;;  %v2475_v10 = vld [vmem:[#allocation9 + $0x68] ss:$12 sps:$4 sm:$0xff]  }
 0x3db   :  { %v565_v21 = vpop.f32.mrb[4].mxu1 }
 0x3dc   :  { %v566_v22 = vadd.f32 %v565_v21, %v482_v19  ;;  %v2284_v26 = vpop.f32.mrb[5].mxu1  ;;  %v2485_v19 = vld [vmem:[#allocation9 + $0x98] ss:$12 sps:$4 sm:$0xff]   ;;  %v2489_v21 = vld [vmem:[#allocation9 + $0x170] ss:$12 sps:$4 sm:$0xff]  }
 0x3dd   :  { %v568_v28 = vpop.f32.mrb[6].mxu1  ;;  %v2490_v26 = vld [vmem:[#allocation9 + $0xb0] ss:$12 sps:$4 sm:$0xff]  }
 0x3de   :  { %v571_v30 = vpack.c.bf16 %v566_v22, %v566_v22  ;;  %v2285_v31 = vpop.f32.mrb[7].mxu1  ;;  %v2486_v22 = vld [vmem:[#allocation9 + $0x168] ss:$12 sps:$4 sm:$0xff]   ;;  %v2493_v28 = vld [vmem:[#allocation9 + $0x184] ss:$12 sps:$4 sm:$0xff]  }
 0x3e0   :  { %2553 = vtanh.bf16 %v571_v30  ;;  %v861_v30 = vadd.s32 128, %v2832_v24 }
 0x3e2   :  { %v863_v31 = vmul.u32 2246822519, %v861_v30  ;;  %v2495_v30 = vld [vmem:[#allocation9 + $0x198] ss:$12 sps:$4 sm:$0xff]  }
 0x3e4   :  { %v2939_v32 = vadd.s32 %v863_v31, %v2835_v25  ;;  %v2498_v31 = vld [vmem:[#allocation9 + $0x1a0] ss:$12 sps:$4 sm:$0xff]  }
 0x3e6   :  { %v868_v33 = vxor.u32 3047822445, %v2939_v32 }
 0x3eb   :  { %v2554_v38 = vpop.eup %2553 }
 0x3ec   :  { %v585_v42 = vsel %vm584_vm8, %v2554_v38, 0 }
 0x3ed   :  { %807 = vmatmul.mubr.bf16.vlgmr.msra.gmra.mrb[8].mxu0 %v585_v42  ;;  %2303 = vmatmul.mubr.bf16.vlgmr.msra.gmra.mrb[8].mxu1 %v585_v42 }
 0x3ee   :  { %1414 = vmatpush1.bf16.msra.mxu0 %v2427_v34  ;;  %2145 = vmatpush3.bf16.msra.mxu1 %v2455_v37  ;;  %v867_v34 = vxor.u32 3047822445, %v2839_v27  ;;  %v871_v37 = vxor.u32 %v868_v33, %v2845_v29 }
 0x3ef   :  { %1415 = vmatprep.subr.bf16.mxu0 %v2432_v39  ;;  %2146 = vmatprep.subr.bf16.mxu1 %v2459_v41 }
 0x3f0   :  { %v870_v38 = vxor.u32 %v867_v34, %v2845_v29  ;;  %v874_v39 = vshrl.u32 %v871_v37, 16  ;;  %v2501_v34 = vld [vmem:[#allocation9 + $0x1b4] ss:$12 sps:$4 sm:$0xff]  }
 0x3f2   :  { %1416 = vmatpush1.bf16.msra.mxu0 %v2430_v36  ;;  %2147 = vmatpush3.bf16.msra.mxu1 %v2460_v43  ;;  %v873_v41 = vshrl.u32 %v870_v38, 16  ;;  %v877_v42 = vxor.u32 %v874_v39, %v871_v37  ;;  %v2502_v39 = vld [vmem:[#allocation9 + $0x1b8] ss:$12 sps:$4 sm:$0xff]  }
 0x3f3   :  { %1417 = vmatprep.subr.bf16.mxu0 %v2435_v44  ;;  %2148 = vmatprep.subr.bf16.mxu1 %v2464_v45  ;;  %v2948_v44 = vld [vmem:[%s3097_s8] sm:$0x3f] }
 0x3f4   :  { %v876_v36 = vxor.u32 %v873_v41, %v870_v38  ;;  %v880_v43 = vmul.u32 2146121005, %v877_v42  ;;  %v2499_v38 = vld [vmem:[#allocation9 + $0x1b0] ss:$12 sps:$4 sm:$0xff]   ;;  %v2505_v42 = vld [vmem:[#allocation9 + $0x1cc] ss:$12 sps:$4 sm:$0xff]  }
 0x3f6   :  { %1418 = vmatpush1.bf16.msra.mxu0 %v2433_v46  ;;  %2149 = vmatpush3.bf16.msra.mxu1 %v2465_v47  ;;  %v879_v45 = vmul.u32 2146121005, %v876_v36  ;;  %v622_v46 = vrot.slane %v2948_v44, %v2849_v35  ;;  %v883_v47 = vshrl.u32 %v880_v43, 15 }
 0x3f7   :  { %1419 = vmatprep.subr.bf16.mxu0 %v2438_v48  ;;  %2150 = vmatprep.subr.bf16.mxu1 %v2469_v49  ;;  %v626_v48 = vrot.slane %v2948_v44, %v357_v40 }
 0x3f8   :  { %v882_v49 = vshrl.u32 %v879_v45, 15 }
 0x3fa   :  { %1420 = vmatpush1.bf16.msra.mxu0 %v2436_v50  ;;  %2151 = vmatpush3.bf16.msra.mxu1 %v2470_v5  ;;  %v862_v50 = vadd.s32 256, %v2832_v24 }
 0x3fb   :  { %1421 = vmatprep.subr.bf16.mxu0 %v2441_v51  ;;  %2152 = vmatprep.subr.bf16.mxu1 %v2474_v8  ;;  %v637_v51 = vrot.slane %v622_v46, %v2849_v35  ;;  %v2509_v46 = vld [vmem:[#allocation9 + $0x1e4] ss:$12 sps:$4 sm:$0xff]  }
 0x3fe   :  { %1422 = vmatpush1.bf16.msra.mxu0 %v2439_v52  ;;  %2153 = vmatpush3.bf16.msra.mxu1 %v2475_v10  ;;  %v886_v52 = vxor.u32 %v883_v47, %v880_v43  ;;  %v2503_v43 = vld [vmem:[#allocation9 + $0x1c8] ss:$12 sps:$4 sm:$0xff]   ;;  %v2507_v47 = vld [vmem:[#allocation9 + $0x1e0] ss:$12 sps:$4 sm:$0xff]  }
 0x3ff   :  { %1423 = vmatprep.subr.bf16.mxu0 %v2444_v53  ;;  %2154 = vmatprep.subr.bf16.mxu1 %v2479_v12  ;;  %v641_v53 = vrot.slane %v626_v48, %v2849_v35  ;;  %v2510_v48 = vld [vmem:[#allocation9 + $0x1e8] ss:$12 sps:$4 sm:$0xff]  }
 0x402   :  { %1424 = vmatpush1.bf16.msra.mxu0 %v2442_v54  ;;  %2155 = vmatpush3.bf16.msra.mxu1 %v2480_v14  ;;  %v885_v54 = vxor.u32 %v882_v49, %v879_v45  ;;  %v2506_v45 = vld [vmem:[#allocation9 + $0x1d0] ss:$12 sps:$4 sm:$0xff]  }
 0x403   :  { %1425 = vmatprep.subr.bf16.mxu0 %v2447_v55  ;;  %2156 = vmatprep.subr.bf16.mxu1 %v2484_v16  ;;  %v864_v55 = vmul.u32 2246822519, %v862_v50  ;;  %v629_v16 = vsub.s32 4, %v2830_v23  ;;  %v2513_v50 = vld [vmem:[#allocation9 + $0x1fc] ss:$12 sps:$4 sm:$0xff]  }
 0x404   :  { %v888_v40 = vmul.u32 2221713035, %v885_v54  ;;  %v2517_v54 = vld [vmem:[#allocation9 + $0x214] ss:$12 sps:$4 sm:$0xff]  }
 0x406   :  { %1426 = vmatpush1.bf16.msra.mxu0 %v2445_v56  ;;  %2157 = vmatpush3.bf16.msra.mxu1 %v2485_v19  ;;  %v2494_v19 = vld [vmem:[#allocation9 + $0x188] ss:$12 sps:$4 sm:$0xff]  }
 0x407   :  { %1427 = vmatprep.subr.bf16.mxu0 %v2450_v57  ;;  %2158 = vmatprep.subr.bf16.mxu1 %v2489_v21 }
 0x40a   :  { %1428 = vmatpush1.bf16.msra.mxu0 %v2448_v58  ;;  %2159 = vmatpush3.bf16.msra.mxu1 %v2490_v26 }
 0x40b   :  { %1429 = vmatprep.subr.bf16.mxu0 %v2453_v59  ;;  %2306 = vmatprep.subr.bf16.mxu1 %v2662_v0 }
 0x40e   :  { %1430 = vmatpush1.bf16.msra.mxu0 %v2451_v60 }
 0x40f   :  { %1431 = vmatprep.subr.bf16.mxu0 %v2458_v61  ;;  %v889_v61 = vmul.u32 2221713035, %v886_v52  ;;  %v2514_v52 = vld [vmem:[#allocation9 + $0x200] ss:$12 sps:$4 sm:$0xff]  }
 0x411   :  { %v892_v8 = vshrl.u32 %v889_v61, 16 }
 0x412   :  { %1432 = vmatpush1.bf16.msra.mxu0 %v2456_v62 }
 0x413   :  { %1433 = vmatprep.subr.bf16.mxu0 %v2463_v63 }
 0x416   :  { %1434 = vmatpush1.bf16.msra.mxu0 %v2461_v2 }
 0x417   :  { %1435 = vmatprep.subr.bf16.mxu0 %v2468_v3  ;;  %v2959_v3 = vadd.s32 %v864_v55, %v2835_v25  ;;  %v2515_v55 = vld [vmem:[#allocation9 + $0x210] ss:$12 sps:$4 sm:$0xff]  }
 0x419   :  { %v869_v10 = vxor.u32 3047822445, %v2959_v3 }
 0x41a   :  { %1436 = vmatpush1.bf16.msra.mxu0 %v2466_v4 }
 0x41b   :  { %1437 = vmatprep.subr.bf16.mxu0 %v2473_v7 }
 0x41e   :  { %1438 = vmatpush1.bf16.msra.mxu0 %v2471_v9  ;;  %v891_v9 = vshrl.u32 %v888_v40, 16 }
 0x41f   :  { %1439 = vmatprep.subr.bf16.mxu0 %v2478_v11  ;;  %v895_v11 = vxor.u32 %v892_v8, %v889_v61  ;;  %v2529_v8 = vld [vmem:[%s3096_s7 + $0x90] sm:$0xff]  }
 0x420   :  { %v894_v12 = vxor.u32 %v891_v9, %v888_v40  ;;  %v2525_v40 = vld [vmem:[%s3096_s7] sm:$0xff]   ;;  %v2531_v9 = vld [vmem:[%s3096_s7 + $0x10] sm:$0xff]  }
 0x421   :  { %vm898_vm9 = vcmp.lt.u32.totalorder %v895_v11, 3006477107  ;;  %v2532_v11 = vld [vmem:[%s3096_s7 + $0x98] sm:$0xff]  }
 0x422   :  { %1440 = vmatpush1.bf16.msra.mxu0 %v2476_v13  ;;  %v872_v13 = vxor.u32 %v869_v10, %v2845_v29  ;;  %vm897_vm10 = vcmp.lt.u32.totalorder %v894_v12, 3006477107  ;;  %vm901_vm11 = vmpackc.low %vm898_vm9, %vm898_vm9  ;;  %v2533_v10 = vld [vmem:[%s3096_s7 + $0x58] sm:$0xff]  }
 0x423   :  { %1441 = vmatprep.subr.bf16.mxu0 %v2483_v15  ;;  %vm900_vm12 = vmpackc.low %vm897_vm10, %vm897_vm10  ;;  %v2534_v12 = vld [vmem:[%s3096_s7 + $0x18] sm:$0xff]  }
 0x424   :  { %v875_v14 = vshrl.u32 %v872_v13, 16 }
 0x426   :  { %1442 = vmatpush1.bf16.msra.mxu0 %v2481_v18  ;;  %v2491_v18 = vld [vmem:[#allocation9 + $0x180] ss:$12 sps:$4 sm:$0xff]  }
 0x427   :  { %1443 = vmatprep.subr.bf16.mxu0 %v2488_v20  ;;  %v878_v20 = vxor.u32 %v875_v14, %v872_v13  ;;  %v2536_v13 = vld [vmem:[%s3096_s7 + $0x60] sm:$0xff]  }
 0x428   :  { %v2535_v14 = vld [vmem:[%s3096_s7 + $0xa0] sm:$0xff]  }
 0x429   :  { %v881_v33 = vmul.u32 2146121005, %v878_v20  ;;  %v2542_v20 = vld [vmem:[%s3096_s7 + $0x70] sm:$0xff]  }
 0x42a   :  { %1444 = vmatpush1.bf16.msra.mxu0 %v2486_v22  ;;  %v2497_v22 = vld [vmem:[#allocation9 + $0x19c] ss:$12 sps:$4 sm:$0xff]  }
 0x42b   :  { %1454 = vmatprep.subr.bf16.mxu0 %v2493_v28  ;;  %v630_v28 = vrot.slane %v2948_v44, %v629_v16  ;;  %v884_v41 = vshrl.u32 %v881_v33, 15  ;;  %v2538_v16 = vld [vmem:[%s3096_s7 + $0xa8] sm:$0xff]  }
 0x42d   :  { %v645_v37 = vrot.slane %v630_v28, %v2849_v35  ;;  %v2546_v28 = vld [vmem:[%s3096_s7 + $0x38] sm:$0xff]  }
 0x4c0   :  { %v808_v56 = vpop.f32.mrb[8].mxu0  ;;  %v849_v57 = vpop.f32.mrb[8].mxu1 }
 0x4c1   :  { %v809_v58 = vadd.f32 %v808_v56, %v637_v51  ;;  %v810_v59 = vpop.f32.mrb[9].mxu0  ;;  %v2304_v60 = vpop.f32.mrb[9].mxu1  ;;  %v850_v36 = vadd.f32 %v849_v57, %v645_v37  ;;  %v2511_v51 = vld [vmem:[#allocation9 + $0x1f8] ss:$12 sps:$4 sm:$0xff]  }
 0x4c2   :  { %v811_v62 = vadd.f32 %v810_v59, %v641_v53  ;;  %v812_v63 = vpop.f32.mrb[10].mxu0  ;;  %v852_v2 = vpop.f32.mrb[10].mxu1  ;;  %v2518_v56 = vld [vmem:[#allocation9 + $0x218] ss:$12 sps:$4 sm:$0xff]   ;;  %v2519_v59 = vld [vmem:[#allocation9 + $0x228] ss:$12 sps:$4 sm:$0xff]  }
 0x4c3   :  { %v855_v24 = vpack.c.bf16 %v809_v58, %v809_v58  ;;  %v813_v4 = vpop.f32.mrb[11].mxu0  ;;  %v2305_v5 = vpop.f32.mrb[11].mxu1  ;;  %v857_v35 = vpack.c.bf16 %v850_v36, %v850_v36  ;;  %v2521_v58 = vld [vmem:[#allocation9 + $0x22c] ss:$12 sps:$4 sm:$0xff]   ;;  %v2522_v60 = vld [vmem:[#allocation9 + $0x230] ss:$12 sps:$4 sm:$0xff]  }
 0x4c4   :  { %v856_v7 = vpack.c.bf16 %v811_v62, %v811_v62  ;;  %v2523_v63 = vld [vmem:[%s3096_s7 + $0x80] sm:$0xff]   ;;  %v2526_v4 = vld [vmem:[%s3096_s7 + $0x88] sm:$0xff]  }
 0x4c5   :  { %2555 = vtanh.bf16 %v855_v24  ;;  %v2524_v2 = vld [vmem:[%s3096_s7 + $0x40] sm:$0xff]   ;;  %v2527_v24 = vld [vmem:[%s3096_s7 + $0x48] sm:$0xff]  }
 0x4c6   :  { %2557 = vtanh.bf16 %v856_v7  ;;  %v2528_v5 = vld [vmem:[%s3096_s7 + $0x8] sm:$0xff]   ;;  %v2530_v7 = vld [vmem:[%s3096_s7 + $0x50] sm:$0xff]  }
 0x4c7   :  { %2559 = vtanh.bf16 %v857_v35 }
 0x4d0   :  { %v2556_v25 = vpop.eup %2555 }
 0x4d1   :  { %v2558_v15 = vpop.eup %2557  ;;  %v903_v26 = vsel %vm900_vm12, %v2556_v25, 0  ;;  %v2537_v25 = vld [vmem:[%s3096_s7 + $0x20] sm:$0xff]  }
 0x4d2   :  { %v904_v21 = vsel %vm901_vm11, %v2558_v15, 0  ;;  %v2560_v61 = vpop.eup %2559  ;;  %v2539_v15 = vld [vmem:[%s3096_s7 + $0x68] sm:$0xff]  }
 0x4d3   :  { %1445 = vmatprep.mubr.bf16.mxu0 %v904_v21  ;;  %1527 = vmatprep.mubr.bf16.mxu1 %v904_v21  ;;  %v2543_v21 = vld [vmem:[%s3096_s7 + $0x30] sm:$0xff]  }
 0x4d4   :  { %1446 = vmatmul.mubr.bf16.vlgmr.msra.gmra.mrb[12].mxu0 %v903_v26  ;;  %1528 = vmatmul.mubr.bf16.vlgmr.msra.gmra.mrb[12].mxu1 %v903_v26  ;;  %v2545_v26 = vld [vmem:[%s3096_s7 + $0x78] sm:$0xff]  }
 0x4d5   :  { %1455 = vmatpush1.bf16.msra.mxu0 %v2491_v18  ;;  %2307 = vmatpush3.bf16.msra.mxu1 %v2494_v19  ;;  %v2540_v18 = vld [vmem:[%s3096_s7 + $0x28] sm:$0xff]   ;;  %v2541_v19 = vld [vmem:[%s3096_s7 + $0xb0] sm:$0xff]  }
 0x4d6   :  { %1456 = vmatprep.subr.bf16.mxu0 %v2497_v22  ;;  %2308 = vmatprep.subr.bf16.mxu1 %v2662_v0  ;;  %v2544_v22 = vld [vmem:[%s3096_s7 + $0xb8] sm:$0xff]  }
 0x4d7   :  { %1486 = vmatprep.mubr.bf16.mxu0 %v2664_v6  ;;  %2322 = vmatprep.mubr.msk.bf16.mxu1 %vm2663_vm0, %v2662_v0  ;;  %v887_v6 = vxor.u32 %v884_v41, %v881_v33 }
 0x4d9   :  { %1457 = vmatpush1.bf16.msra.mxu0 %v2495_v30  ;;  %2309 = vmatpush3.bf16.msra.mxu1 %v2498_v31  ;;  %v890_v49 = vmul.u32 2221713035, %v887_v6  ;;  %v1579_v30 = vxor.u32 3716087708, %v2939_v32  ;;  %v1578_v31 = vxor.u32 3716087708, %v2839_v27 }
 0x4da   :  { %1458 = vmatprep.subr.bf16.mxu0 %v2501_v34  ;;  %2310 = vmatprep.subr.bf16.mxu1 %v2662_v0 }
 0x4db   :  { %v893_v53 = vshrl.u32 %v890_v49, 16  ;;  %v1582_v34 = vxor.u32 %v1579_v30, %v2845_v29  ;;  %v1581_v37 = vxor.u32 %v1578_v31, %v2845_v29 }
 0x4dd   :  { %1459 = vmatpush1.bf16.msra.mxu0 %v2499_v38  ;;  %2311 = vmatpush3.bf16.msra.mxu1 %v2502_v39  ;;  %v896_v57 = vxor.u32 %v893_v53, %v890_v49  ;;  %v1585_v41 = vshrl.u32 %v1582_v34, 16  ;;  %v1584_v36 = vshrl.u32 %v1581_v37, 16  ;;  %v1012_v53 = vsub.s32 5, %v2830_v23 }
 0x4de   :  { %1460 = vmatprep.subr.bf16.mxu0 %v2505_v42  ;;  %2312 = vmatprep.subr.bf16.mxu1 %v2662_v0 }
 0x4df   :  { %vm899_vm13 = vcmp.lt.u32.totalorder %v896_v57, 3006477107  ;;  %v1587_v35 = vxor.u32 %v1584_v36, %v1581_v37  ;;  %v1013_v57 = vrot.slane %v2948_v44, %v1012_v53 }
 0x4e0   :  { %vm902_vm14 = vmpackc.low %vm899_vm13, %vm899_vm13 }
 0x4e1   :  { %1461 = vmatpush1.bf16.msra.mxu0 %v2503_v43  ;;  %2313 = vmatpush3.bf16.msra.mxu1 %v2506_v45  ;;  %v905_v62 = vsel %vm902_vm14, %v2560_v61, 0  ;;  %v1590_v27 = vmul.u32 2146121005, %v1587_v35 }
 0x4e2   :  { %1462 = vmatprep.subr.bf16.mxu0 %v2509_v46  ;;  %2314 = vmatprep.subr.bf16.mxu1 %v2662_v0 }
 0x4e5   :  { %1463 = vmatpush1.bf16.msra.mxu0 %v2507_v47  ;;  %2315 = vmatpush3.bf16.msra.mxu1 %v2510_v48 }
 0x4e6   :  { %1464 = vmatprep.subr.bf16.mxu0 %v2513_v50  ;;  %2316 = vmatprep.subr.bf16.mxu1 %v2662_v0  ;;  %v1593_v50 = vshrl.u32 %v1590_v27, 15 }
 0x4e9   :  { %1465 = vmatpush1.bf16.msra.mxu0 %v2511_v51  ;;  %2317 = vmatpush3.bf16.msra.mxu1 %v2514_v52 }
 0x4ea   :  { %1466 = vmatprep.subr.bf16.mxu0 %v2517_v54  ;;  %2318 = vmatprep.subr.bf16.mxu1 %v2662_v0 }
 0x4ed   :  { %1467 = vmatpush1.bf16.msra.mxu0 %v2515_v55  ;;  %2319 = vmatpush3.bf16.msra.mxu1 %v2518_v56 }
 0x4ee   :  { %1468 = vmatprep.subr.bf16.mxu0 %v2521_v58  ;;  %2320 = vmatprep.subr.bf16.mxu1 %v2662_v0 }
 0x4f1   :  { %1469 = vmatpush1.bf16.msra.mxu0 %v2519_v59  ;;  %2321 = vmatpush3.bf16.msra.mxu1 %v2522_v60  ;;  %v1005_v60 = vrot.slane %v2948_v44, %v2894_v1 }
 0x4f2   :  { %2326 = vmatprep.subr.bf16.mxu0 %v2662_v0  ;;  %2175 = vmatprep.subr.bf16.mxu1 %v2524_v2 }
 0x4f4   :  { %1487 = vmatmul.mubr.bf16.vlgmr.msra.gmra.mrb[12].mxu0 %v905_v62  ;;  %2323 = vmatmul.mubr.bf16.vlgmr.msra.gmra.mrb[16].mxu1 %v905_v62  ;;  %v1009_v62 = vrot.slane %v2948_v44, %v481_v17 }
 0x4f5   :  { %2342 = vmatprep.mubr.msk.bf16.mxu0 %vm2663_vm0, %v2662_v0  ;;  %2327 = vmatpush3.bf16.msra.mxu0 %v2523_v63  ;;  %v1028_v63 = vrot.slane %v1013_v57, %v2894_v1 }
 0x4f6   :  { %2176 = vmatpush3.bf16.msra.mxu1 %v2525_v40  ;;  %2328 = vmatprep.subr.bf16.mxu0 %v2662_v0 }
 0x4f7   :  { %2177 = vmatprep.subr.bf16.mxu1 %v2527_v24  ;;  %v1020_v24 = vrot.slane %v1005_v60, %v2894_v1 }
 0x4f9   :  { %2329 = vmatpush3.bf16.msra.mxu0 %v2526_v4 }
 0x4fa   :  { %2178 = vmatpush3.bf16.msra.mxu1 %v2528_v5  ;;  %2330 = vmatprep.subr.bf16.mxu0 %v2662_v0  ;;  %v1024_v5 = vrot.slane %v1009_v62, %v2894_v1 }
 0x4fb   :  { %2179 = vmatprep.subr.bf16.mxu1 %v2530_v7 }
 0x4fd   :  { %2331 = vmatpush3.bf16.msra.mxu0 %v2529_v8 }
 0x4fe   :  { %2180 = vmatpush3.bf16.msra.mxu1 %v2531_v9  ;;  %2332 = vmatprep.subr.bf16.mxu0 %v2662_v0 }
 0x4ff   :  { %2181 = vmatprep.subr.bf16.mxu1 %v2533_v10 }
 0x501   :  { %2333 = vmatpush3.bf16.msra.mxu0 %v2532_v11 }
 0x502   :  { %2182 = vmatpush3.bf16.msra.mxu1 %v2534_v12  ;;  %2334 = vmatprep.subr.bf16.mxu0 %v2662_v0 }
 0x503   :  { %2183 = vmatprep.subr.bf16.mxu1 %v2536_v13 }
 0x505   :  { %2335 = vmatpush3.bf16.msra.mxu0 %v2535_v14 }
 0x506   :  { %2184 = vmatpush3.bf16.msra.mxu1 %v2537_v25  ;;  %2336 = vmatprep.subr.bf16.mxu0 %v2662_v0 }
 0x507   :  { %2185 = vmatprep.subr.bf16.mxu1 %v2539_v15 }
 0x509   :  { %2337 = vmatpush3.bf16.msra.mxu0 %v2538_v16 }
 0x50a   :  { %2186 = vmatpush3.bf16.msra.mxu1 %v2540_v18  ;;  %2338 = vmatprep.subr.bf16.mxu0 %v2662_v0 }
 0x50b   :  { %2187 = vmatprep.subr.bf16.mxu1 %v2542_v20 }
 0x50d   :  { %2339 = vmatpush3.bf16.msra.mxu0 %v2541_v19 }
 0x50e   :  { %2340 = vmatprep.subr.bf16.mxu0 %v2662_v0  ;;  %2188 = vmatpush3.bf16.msra.mxu1 %v2543_v21  ;;  %v1580_v0 = vxor.u32 3716087708, %v2959_v3  ;;  %v1588_v3 = vxor.u32 %v1585_v41, %v1582_v34 }
 0x50f   :  { %2189 = vmatprep.subr.bf16.mxu1 %v2545_v26 }
 0x510   :  { %v1583_v33 = vxor.u32 %v1580_v0, %v2845_v29  ;;  %v1591_v47 = vmul.u32 2146121005, %v1588_v3  ;;  %v1596_v29 = vxor.u32 %v1593_v50, %v1590_v27  ;;  %v2074_v0 = vld [vmem:[%s3098_s9] ss:$0 sm:$0xff] }
 0x511   :  { %2341 = vmatpush3.bf16.msra.mxu0 %v2544_v22 }
 0x512   :  { %2190 = vmatpush3.bf16.msra.mxu1 %v2546_v28  ;;  %v1586_v38 = vshrl.u32 %v1583_v33, 16  ;;  %v1594_v49 = vshrl.u32 %v1591_v47, 15  ;;  %v1599_v56 = vmul.u32 2221713035, %v1596_v29 }
 0x514   :  { %v1589_v46 = vxor.u32 %v1586_v38, %v1583_v33  ;;  %v1597_v52 = vxor.u32 %v1594_v49, %v1591_v47  ;;  %v1602_v61 = vshrl.u32 %v1599_v56, 16 }
 0x516   :  { %v1592_v32 = vmul.u32 2146121005, %v1589_v46  ;;  %v1600_v55 = vmul.u32 2221713035, %v1597_v52  ;;  %v1605_v4 = vxor.u32 %v1602_v61, %v1599_v56 }
 0x518   :  { %v1595_v48 = vshrl.u32 %v1592_v32, 15  ;;  %v1603_v59 = vshrl.u32 %v1600_v55, 16  ;;  %vm1608_vm1 = vcmp.lt.u32.totalorder %v1605_v4, 3006477107 }
 0x519   :  { %vm1611_vm4 = vmpackc.low %vm1608_vm1, %vm1608_vm1 }
 0x51a   :  { %v1598_v51 = vxor.u32 %v1595_v48, %v1592_v32  ;;  %v1606_v40 = vxor.u32 %v1603_v59, %v1600_v55 }
 0x51c   :  { %v1601_v54 = vmul.u32 2221713035, %v1598_v51  ;;  %vm1609_vm0 = vcmp.lt.u32.totalorder %v1606_v40, 3006477107 }
 0x51d   :  { %vm1612_vm3 = vmpackc.low %vm1609_vm0, %vm1609_vm0 }
 0x51e   :  { %v1604_v58 = vshrl.u32 %v1601_v54, 16 }
 0x520   :  { %v1607_v2 = vxor.u32 %v1604_v58, %v1601_v54 }
 0x522   :  { %vm1610_vm15 = vcmp.lt.u32.totalorder %v1607_v2, 3006477107 }
 0x523   :  { %vm1613_vm2 = vmpackc.low %vm1610_vm15, %vm1610_vm15 }
 0x5a7   :  { %v2160_v39 = vpop.f32.mrb[12].mxu1 }
 0x5a8   :  { %v2161_v42 = vpop.f32.mrb[13].mxu1 }
 0x5a9   :  { %v2162_v43 = vadd.f32 %v2161_v42, %v2160_v39  ;;  %v2163_v45 = vpop.f32.mrb[14].mxu1 }
 0x5aa   :  { %v2164_v6 = vpop.f32.mrb[15].mxu1 }
 0x5ab   :  { %v1530_v7 = vadd.f32 %v2162_v43, %v1028_v63 }
 0x5c7   :  { %v1488_v8 = vpop.f32.mrb[12].mxu0  ;;  %v1569_v9 = vpop.f32.mrb[16].mxu1 }
 0x5c8   :  { %v2346_v10 = vadd.f32 %v1488_v8, %v1020_v24  ;;  %v1570_v11 = vadd.f32 %v1569_v9, %v1530_v7  ;;  %v1490_v23 = vpop.f32.mrb[13].mxu0  ;;  %v2324_v12 = vpop.f32.mrb[17].mxu1 }
 0x5c9   :  { %v2347_v17 = vadd.f32 %v1490_v23, %v1024_v5  ;;  %v1492_v44 = vpop.f32.mrb[14].mxu0  ;;  %v1572_v13 = vpop.f32.mrb[18].mxu1 }
 0x5ca   :  { %v1575_v14 = vpack.c.bf16 %v2346_v10, %v2346_v10  ;;  %v1577_v25 = vpack.c.bf16 %v1570_v11, %v1570_v11  ;;  %v1493_v15 = vpop.f32.mrb[15].mxu0  ;;  %v2325_v16 = vpop.f32.mrb[19].mxu1 }
 0x5cb   :  { %v1576_v1 = vpack.c.bf16 %v2347_v17, %v2347_v17 }
 0x5cc   :  { %v1616_v18 = vsel %vm1613_vm2, %v1577_v25, 0  ;;  %v1614_v20 = vsel %vm1611_vm4, %v1575_v14, 0 }
 0x5cd   :  { %2343 = vmatmul.mubr.bf16.vlgmr.msra.gmra.mrb[16].mxu0 %v1616_v18  ;;  %v1615_v19 = vsel %vm1612_vm3, %v1576_v1, 0 }
 0x5ce   :  { %1848 = vmatprep.mubr.bf16.mxu1 %v1615_v19 }
 0x5cf   :  { %1849 = vmatmul.mubr.bf16.vlgmr.msra.gmra.mrb[20].mxu1 %v1614_v20 }
 0x6a0   :  { %v1890_v21 = vpop.f32.mrb[16].mxu0 }
 0x6a1   :  { %v2344_v22 = vpop.f32.mrb[17].mxu0 }
 0x6a2   :  { %v2191_v26 = vpop.f32.mrb[20].mxu1  ;;  %v1893_v28 = vpop.f32.mrb[18].mxu0 }
 0x6a3   :  { %v2192_v30 = vpop.f32.mrb[21].mxu1  ;;  %v2345_v31 = vpop.f32.mrb[19].mxu0 }
 0x6a4   :  { %v2193_v33 = vadd.f32 %v2192_v30, %v2191_v26  ;;  %v2194_v34 = vpop.f32.mrb[22].mxu1 }
 0x6a5   :  { %v2195_v37 = vpop.f32.mrb[23].mxu1 }
 0x6a6   :  { %v1851_v38 = vadd.f32 %v2193_v33, %v2074_v0 }
 0x6a8   :  { %v1891_v39 = vadd.f32 %v1890_v21, %v1851_v38 }
 0x6aa   :  { %1897 = vst.msk [vmem:[#allocation10] sm:$0xff] %vm1896_vm5, %v1891_v39 }
 0x6ab   :  { %2638 = shalt.err (!%p2635_p0)
}
 0x6ac   :  { %s2639_s13 = scalar_lea.hbm %s3099_s10, 128 }
 0x6ad   :  { %p2640_p1 = scmp.ne.s32.totalorder %s3099_s10, %s2639_s13  ;;  %p2643_p2 = scmp.lt.u32.totalorder %s2639_s13, %s3099_s10 }
 0x6af   :  { %p2645_p3 = pnand %p2643_p2, %p2640_p1 }
 0x6b1   :  { %2648 = shalt.err (!%p2645_p3)
}
 0x6b2   :  { %1907 = dma.vmem_to_hbm [thread:$0]  %s1905_s6, 128, %s3099_s10, [#allocation6]  }
 0x6b3   :  { %2653 = dma.done.wait [#allocation6], 128  }
 0x6b4   :  { %2654 = vsyncadd [#allocation6], 4294967168 }
 0x6b5   :  { %1911 = vsyncpa [#allocation5], 1 }
 0x6b6   :  { %1912 = vsyncpa [#allocation8], 1 }
 0x6b7   :  { %1913 = vsyncpa [#allocation6], 1 }

</bundles_post_ra>
